<compile_context>
chip_gen: v7x
topology: tpu7x:2x2x1
jax: 0.10.0
libtpu: 0.0.40
codegen_flags: <defaults>
</compile_context>

<pallas_src>
import jax
import jax.numpy as jnp
from jax.experimental import pallas as pl
from jax.experimental.pallas import tpu as pltpu


# ----------------------------------------------------------------------------
# Kernel
# ----------------------------------------------------------------------------
def _make_resblock_kernel(Bblk, H, W, C, mxu_dtype):
    WC = W * C
    M = Bblk * H            # matmul rows; lanes carry the W*C axis

    def conv3x3_banded(x3d, w_ref):
        """x3d: (Bblk, H, WC) in mxu_dtype.  Returns f32 (M, WC)."""
        # Zero-pad H by one row per side; the three dy taps are then plain row
        # slices (sublane offsets only, no lane shuffles).  dx shifts and the
        # width-border zeros are baked into the block-banded weights.
        xp = jnp.pad(x3d, ((0, 0), (1, 1), (0, 0)))
        acc = None
        for dy in range(3):
            tap = xp[:, dy:dy + H, :].reshape(M, WC)
            part = jnp.dot(tap, w_ref[dy], preferred_element_type=jnp.float32)
            acc = part if acc is None else acc + part
        return acc

    def kernel(x_ref, w1_ref, b1_ref, w2_ref, b2_ref, o_ref):
        x32 = x_ref[...].astype(jnp.float32)                # (Bblk, H, WC) residual copy
        # conv1 -> bias -> ReLU (bias/ReLU at full 256-lane density)
        r = conv3x3_banded(x32.astype(mxu_dtype), w1_ref)
        r = jnp.maximum(r + b1_ref[...], 0.0)
        # conv2 -> bias
        r = conv3x3_banded(r.astype(mxu_dtype).reshape(Bblk, H, WC), w2_ref)
        r = r + b2_ref[...]
        # residual add (f32) + lane-dense store
        out = r + x32.reshape(M, WC)
        o_ref[...] = out.reshape(Bblk, H, WC).astype(o_ref.dtype)

    return kernel


# ----------------------------------------------------------------------------
# Weight packing / sizing helpers
# ----------------------------------------------------------------------------
def _pack_banded_weights(w_hwio, W, mxu_dtype):
    """(3,3,Cin,Cout) -> (3, W*Cin, W*Cout) block-banded matrices (one per dy).

    Block (row w_in, col w_out) = w[dy, dx] with w_in = w_out + dx - 1 when
    0 <= w_in < W; missing blocks encode the SAME-padding zeros at the width
    borders, so the kernel needs no lane shifts or masks.
    """
    C = w_hwio.shape[-1]
    mats = []
    for dy in range(3):
        m = jnp.zeros((W * C, W * C), jnp.float32)
        for dx in range(3):
            shift = jnp.eye(W, k=1 - dx, dtype=jnp.float32)   # w_in = w_out + dx - 1
            m = m + jnp.kron(shift, w_hwio[dy, dx].astype(jnp.float32))
        mats.append(m)
    return jnp.stack(mats).astype(mxu_dtype)


def _vmem_budget_bytes():
    try:
        cap = pltpu.get_tpu_info().vmem_capacity_bytes       # 64 MiB v7x, 128 MiB v5e/v6e
    except Exception:
        cap = 64 * 1024 * 1024                                # conservative (v7x) fallback
    return int(min(0.75 * cap, 100 * 1024 * 1024))


def _pick_block_batch(B, per_step_bytes, budget, min_steps=8):
    divisors = [d for d in range(1, B + 1) if B % d == 0]
    fit = [d for d in divisors if per_step_bytes(d) <= budget] or [1]
    # Keep enough grid steps for the software pipeline (and >=4/core on v7x).
    piped = [d for d in fit if B // d >= min(min_steps, B)]
    return max(piped) if piped else min(fit)


# ----------------------------------------------------------------------------
# Wrapper (NHWC fast path)
# ----------------------------------------------------------------------------
def resblock_forward(x_nhwc, params, *, block_batch=None, mxu_dtype=jnp.bfloat16):
    """ResBlock forward. x_nhwc: (B, H, W, C) -> (B, H, W, C)."""
    w1, b1, w2, b2 = params
    B, H, W, C = x_nhwc.shape
    WC = W * C
    x_itemsize = x_nhwc.dtype.itemsize
    mxu_itemsize = jnp.dtype(mxu_dtype).itemsize

    # Pre-packed lane-dense weights/biases (done once, outside the grid).
    w1b = _pack_banded_weights(w1, W, mxu_dtype)                       # (3, WC, WC)
    w2b = _pack_banded_weights(w2, W, mxu_dtype)
    b1t = jnp.tile(b1.reshape(1, C).astype(jnp.float32), (1, W))       # (1, WC)
    b2t = jnp.tile(b2.reshape(1, C).astype(jnp.float32), (1, W))

    budget = _vmem_budget_bytes()

    def per_step_bytes(bb):
        io = bb * H * WC * x_itemsize                                  # one x or out block
        wts = 2 * 3 * WC * WC * mxu_itemsize + 2 * WC * 4              # weights + biases
        live = (bb * (H + 2) * WC * mxu_itemsize                       # H-padded copy
                + bb * H * WC * (mxu_itemsize + 3 * 4))                # tap + f32 acc/r/out
        return 4 * io + 2 * wts + live                                 # x/out + wts dbl-buffered

    if block_batch is None:
        block_batch = _pick_block_batch(B, per_step_bytes, budget)
    assert B % block_batch == 0, (B, block_batch)
    grid = (B // block_batch,)

    # Lane-dense I/O: collapse (W, C) -> W*C (contiguous; no data movement).
    x_ld = x_nhwc.reshape(B, H, WC)

    kernel = _make_resblock_kernel(block_batch, H, W, C, mxu_dtype)
    fixed = lambda shp: pl.BlockSpec(shp, lambda b: tuple(0 for _ in shp))

    flops = 4 * B * H * W * (9 * C) * C                                # 2 convs x 2 flop/MAC
    bytes_accessed = (2 * B * H * WC * x_itemsize
                      + 2 * 3 * WC * WC * mxu_itemsize + 2 * WC * 4)

    out_ld = pl.pallas_call(
        kernel,
        out_shape=jax.ShapeDtypeStruct((B, H, WC), x_nhwc.dtype),
        grid_spec=pltpu.PrefetchScalarGridSpec(
            num_scalar_prefetch=0,
            grid=grid,
            in_specs=[
                pl.BlockSpec((block_batch, H, WC), lambda b: (b, 0, 0)),
                # Grid-invariant weights/biases: constant index_map => DMA'd once.
                # TODO(synk): single-buffer these (pipeline_mode=pl.Buffered(1))
                # to trim VMEM once that is worthwhile for larger C.
                fixed(w1b.shape), fixed(b1t.shape),
                fixed(w2b.shape), fixed(b2t.shape),
            ],
            out_specs=pl.BlockSpec((block_batch, H, WC), lambda b: (b, 0, 0)),
        ),
        compiler_params=pltpu.CompilerParams(
            dimension_semantics=("parallel",),
            vmem_limit_bytes=budget),
        cost_estimate=pl.CostEstimate(
            flops=flops, transcendentals=0, bytes_accessed=bytes_accessed),
    )(x_ld, w1b, b1t, w2b, b2t)

    return out_ld.reshape(B, H, W, C)


def resblock_forward_nchw(x_nchw, params, **kw):
    """PyTorch-layout convenience wrapper. In a real network, do this relayout
    once at the network boundary, not per block (it is an HBM round-trip)."""
    x_nhwc = jnp.transpose(x_nchw, (0, 2, 3, 1))
    return jnp.transpose(resblock_forward(x_nhwc, params, **kw), (0, 3, 1, 2))


# ----------------------------------------------------------------------------
# Params + pure-JAX reference
# ----------------------------------------------------------------------------
def init_params(key, n_feat, dtype=jnp.float32):
    # 3x3 conv weights stored as (kh, kw, Cin, Cout); biases as (Cout,).
    # Porting PyTorch weights (Cout, Cin, kh, kw): transpose with (2, 3, 1, 0).
    ks = jax.random.split(key, 4)
    scale = (9.0 * n_feat) ** -0.5
    w1 = (jax.random.normal(ks[0], (3, 3, n_feat, n_feat)) * scale).astype(dtype)
    b1 = (jax.random.normal(ks[1], (n_feat,)) * 0.01).astype(dtype)
    w2 = (jax.random.normal(ks[2], (3, 3, n_feat, n_feat)) * scale).astype(dtype)
    b2 = (jax.random.normal(ks[3], (n_feat,)) * 0.01).astype(dtype)
    return (w1, b1, w2, b2)


def _resblock_reference(x_nhwc, params):
    w1, b1, w2, b2 = params
    dn = ("NHWC", "HWIO", "NHWC")
    r = jax.lax.conv_general_dilated(x_nhwc, w1, (1, 1), "SAME",
                                     dimension_numbers=dn) + b1.reshape(1, 1, 1, -1)
    r = jnp.maximum(r, 0.0)
    r = jax.lax.conv_general_dilated(r, w2, (1, 1), "SAME",
                                     dimension_numbers=dn) + b2.reshape(1, 1, 1, -1)
    return r + x_nhwc


# ----------------------------------------------------------------------------
# Demo
# ----------------------------------------------------------------------------
if __name__ == "__main__":
    key = jax.random.PRNGKey(0)
    kx, kp = jax.random.split(key)

    # NHWC; W*C = 256 keeps every DMA / store / elementwise op lane-dense.
    B, H, W, C = 8, 16, 16, 16
    x = jax.random.normal(kx, (B, H, W, C), dtype=jnp.float32)
    params = init_params(kp, C)

    ref = _resblock_reference(x, params)

    # Structural correctness with f32 MXU operands (tight tolerance).
    out_f32 = resblock_forward(x, params, mxu_dtype=jnp.float32)
    jax.block_until_ready(out_f32)
    err_exact = float(jnp.max(jnp.abs(out_f32 - ref)))
    assert err_exact < 1e-3, f"f32-operand max abs error {err_exact}"

    # Fast path (default): bf16 MXU operands, f32 accumulation + f32 residual.
    out = resblock_forward(x, params)
    jax.block_until_ready(out)
    assert out.shape == (B, H, W, C)
    err_bf16 = float(jnp.max(jnp.abs(out - ref)))
    assert err_bf16 < 1e-1, f"bf16-operand max abs error {err_bf16}"

    print("KERNEL_OK")
</pallas_src>

<mosaic_0001>
module attributes {stable_mosaic.version = 11 : i64} {
  func.func @kernel(%arg0: i32, %arg1: memref<1x16x256xf32, #tpu.memory_space<vmem>>, %arg2: memref<3x256x256xf32, #tpu.memory_space<vmem>>, %arg3: memref<1x256xf32, #tpu.memory_space<vmem>>, %arg4: memref<3x256x256xf32, #tpu.memory_space<vmem>>, %arg5: memref<1x256xf32, #tpu.memory_space<vmem>>, %arg6: memref<1x16x256xf32, #tpu.memory_space<vmem>>) attributes {dimension_semantics = [#tpu.dimension_semantics<parallel>], iteration_bounds = array<i64: 8>, scalar_prefetch = 0 : i64, scratch_operands = 0 : i64, tpu.core_type = #tpu.core_type<tc>, window_params = [{transform_indices = @transform_0, window_bounds = array<i64: 1, 16, 256>}, {pipeline_mode = #tpu.pipeline_mode<synchronous>, transform_indices = @transform_1, window_bounds = array<i64: 3, 256, 256>}, {pipeline_mode = #tpu.pipeline_mode<synchronous>, transform_indices = @transform_2, window_bounds = array<i64: 1, 256>}, {pipeline_mode = #tpu.pipeline_mode<synchronous>, transform_indices = @transform_3, window_bounds = array<i64: 3, 256, 256>}, {pipeline_mode = #tpu.pipeline_mode<synchronous>, transform_indices = @transform_4, window_bounds = array<i64: 1, 256>}, {transform_indices = @transform_5, window_bounds = array<i64: 1, 16, 256>}]} {
    %c0 = arith.constant 0 : index
    %c0_0 = arith.constant 0 : index
    %c0_1 = arith.constant 0 : index
    %0 = vector.load %arg1[%c0, %c0_0, %c0_1] : memref<1x16x256xf32, #tpu.memory_space<vmem>>, vector<1x16x256xf32>
    %c0_i32 = arith.constant 0 : i32
    %1 = arith.sitofp %c0_i32 : i32 to f32
    %2 = vector.broadcast %1 : f32 to vector<1x1x256xf32>
    %3 = tpu.concatenate %2, %0 in 1 : vector<1x1x256xf32>, vector<1x16x256xf32> -> vector<1x17x256xf32>
    %4 = vector.broadcast %1 : f32 to vector<1x1x256xf32>
    %5 = tpu.concatenate %3, %4 in 1 : vector<1x17x256xf32>, vector<1x1x256xf32> -> vector<1x18x256xf32>
    %6 = vector.extract_strided_slice %5 {offsets = [0, 0, 0], sizes = [1, 16, 256], strides = [1, 1, 1]} : vector<1x18x256xf32> to vector<1x16x256xf32>
    %7 = vector.shape_cast %6 : vector<1x16x256xf32> to vector<16x256xf32>
    %c0_2 = arith.constant 0 : index
    %c0_3 = arith.constant 0 : index
    %c0_4 = arith.constant 0 : index
    %8 = vector.load %arg2[%c0_2, %c0_3, %c0_4] : memref<3x256x256xf32, #tpu.memory_space<vmem>>, vector<1x256x256xf32>
    %9 = vector.shape_cast %8 : vector<1x256x256xf32> to vector<256x256xf32>
    %cst = arith.constant dense<0.000000e+00> : vector<16x256xf32>
    %10 = tpu.matmul %7, %9, %cst {dimension_numbers = #tpu.dot_dimension_numbers<[1], [0], [0], [1], [0, 0, 1, 1], [], []>} : vector<16x256xf32>, vector<256x256xf32>, vector<16x256xf32> -> vector<16x256xf32>
    %11 = vector.extract_strided_slice %5 {offsets = [0, 1, 0], sizes = [1, 16, 256], strides = [1, 1, 1]} : vector<1x18x256xf32> to vector<1x16x256xf32>
    %12 = vector.shape_cast %11 : vector<1x16x256xf32> to vector<16x256xf32>
    %c1 = arith.constant 1 : index
    %c0_5 = arith.constant 0 : index
    %c0_6 = arith.constant 0 : index
    %13 = vector.load %arg2[%c1, %c0_5, %c0_6] : memref<3x256x256xf32, #tpu.memory_space<vmem>>, vector<1x256x256xf32>
    %14 = vector.shape_cast %13 : vector<1x256x256xf32> to vector<256x256xf32>
    %cst_7 = arith.constant dense<0.000000e+00> : vector<16x256xf32>
    %15 = tpu.matmul %12, %14, %cst_7 {dimension_numbers = #tpu.dot_dimension_numbers<[1], [0], [0], [1], [0, 0, 1, 1], [], []>} : vector<16x256xf32>, vector<256x256xf32>, vector<16x256xf32> -> vector<16x256xf32>
    %16 = arith.addf %10, %15 : vector<16x256xf32>
    %17 = vector.extract_strided_slice %5 {offsets = [0, 2, 0], sizes = [1, 16, 256], strides = [1, 1, 1]} : vector<1x18x256xf32> to vector<1x16x256xf32>
    %18 = vector.shape_cast %17 : vector<1x16x256xf32> to vector<16x256xf32>
    %c2 = arith.constant 2 : index
    %c0_8 = arith.constant 0 : index
    %c0_9 = arith.constant 0 : index
    %19 = vector.load %arg2[%c2, %c0_8, %c0_9] : memref<3x256x256xf32, #tpu.memory_space<vmem>>, vector<1x256x256xf32>
    %20 = vector.shape_cast %19 : vector<1x256x256xf32> to vector<256x256xf32>
    %cst_10 = arith.constant dense<0.000000e+00> : vector<16x256xf32>
    %21 = tpu.matmul %18, %20, %cst_10 {dimension_numbers = #tpu.dot_dimension_numbers<[1], [0], [0], [1], [0, 0, 1, 1], [], []>} : vector<16x256xf32>, vector<256x256xf32>, vector<16x256xf32> -> vector<16x256xf32>
    %22 = arith.addf %16, %21 : vector<16x256xf32>
    %c0_11 = arith.constant 0 : index
    %c0_12 = arith.constant 0 : index
    %23 = vector.load %arg3[%c0_11, %c0_12] : memref<1x256xf32, #tpu.memory_space<vmem>>, vector<1x256xf32>
    %24 = vector.broadcast %23 : vector<1x256xf32> to vector<16x256xf32>
    %25 = arith.addf %22, %24 : vector<16x256xf32>
    %cst_13 = arith.constant 0.000000e+00 : f32
    %26 = vector.broadcast %cst_13 : f32 to vector<16x256xf32>
    %27 = arith.maximumf %25, %26 : vector<16x256xf32>
    %28 = vector.shape_cast %27 : vector<16x256xf32> to vector<1x16x256xf32>
    %c0_i32_14 = arith.constant 0 : i32
    %29 = arith.sitofp %c0_i32_14 : i32 to f32
    %30 = vector.broadcast %29 : f32 to vector<1x1x256xf32>
    %31 = tpu.concatenate %30, %28 in 1 : vector<1x1x256xf32>, vector<1x16x256xf32> -> vector<1x17x256xf32>
    %32 = vector.broadcast %29 : f32 to vector<1x1x256xf32>
    %33 = tpu.concatenate %31, %32 in 1 : vector<1x17x256xf32>, vector<1x1x256xf32> -> vector<1x18x256xf32>
    %34 = vector.extract_strided_slice %33 {offsets = [0, 0, 0], sizes = [1, 16, 256], strides = [1, 1, 1]} : vector<1x18x256xf32> to vector<1x16x256xf32>
    %35 = vector.shape_cast %34 : vector<1x16x256xf32> to vector<16x256xf32>
    %c0_15 = arith.constant 0 : index
    %c0_16 = arith.constant 0 : index
    %c0_17 = arith.constant 0 : index
    %36 = vector.load %arg4[%c0_15, %c0_16, %c0_17] : memref<3x256x256xf32, #tpu.memory_space<vmem>>, vector<1x256x256xf32>
    %37 = vector.shape_cast %36 : vector<1x256x256xf32> to vector<256x256xf32>
    %cst_18 = arith.constant dense<0.000000e+00> : vector<16x256xf32>
    %38 = tpu.matmul %35, %37, %cst_18 {dimension_numbers = #tpu.dot_dimension_numbers<[1], [0], [0], [1], [0, 0, 1, 1], [], []>} : vector<16x256xf32>, vector<256x256xf32>, vector<16x256xf32> -> vector<16x256xf32>
    %39 = vector.extract_strided_slice %33 {offsets = [0, 1, 0], sizes = [1, 16, 256], strides = [1, 1, 1]} : vector<1x18x256xf32> to vector<1x16x256xf32>
    %40 = vector.shape_cast %39 : vector<1x16x256xf32> to vector<16x256xf32>
    %c1_19 = arith.constant 1 : index
    %c0_20 = arith.constant 0 : index
    %c0_21 = arith.constant 0 : index
    %41 = vector.load %arg4[%c1_19, %c0_20, %c0_21] : memref<3x256x256xf32, #tpu.memory_space<vmem>>, vector<1x256x256xf32>
    %42 = vector.shape_cast %41 : vector<1x256x256xf32> to vector<256x256xf32>
    %cst_22 = arith.constant dense<0.000000e+00> : vector<16x256xf32>
    %43 = tpu.matmul %40, %42, %cst_22 {dimension_numbers = #tpu.dot_dimension_numbers<[1], [0], [0], [1], [0, 0, 1, 1], [], []>} : vector<16x256xf32>, vector<256x256xf32>, vector<16x256xf32> -> vector<16x256xf32>
    %44 = arith.addf %38, %43 : vector<16x256xf32>
    %45 = vector.extract_strided_slice %33 {offsets = [0, 2, 0], sizes = [1, 16, 256], strides = [1, 1, 1]} : vector<1x18x256xf32> to vector<1x16x256xf32>
    %46 = vector.shape_cast %45 : vector<1x16x256xf32> to vector<16x256xf32>
    %c2_23 = arith.constant 2 : index
    %c0_24 = arith.constant 0 : index
    %c0_25 = arith.constant 0 : index
    %47 = vector.load %arg4[%c2_23, %c0_24, %c0_25] : memref<3x256x256xf32, #tpu.memory_space<vmem>>, vector<1x256x256xf32>
    %48 = vector.shape_cast %47 : vector<1x256x256xf32> to vector<256x256xf32>
    %cst_26 = arith.constant dense<0.000000e+00> : vector<16x256xf32>
    %49 = tpu.matmul %46, %48, %cst_26 {dimension_numbers = #tpu.dot_dimension_numbers<[1], [0], [0], [1], [0, 0, 1, 1], [], []>} : vector<16x256xf32>, vector<256x256xf32>, vector<16x256xf32> -> vector<16x256xf32>
    %50 = arith.addf %44, %49 : vector<16x256xf32>
    %c0_27 = arith.constant 0 : index
    %c0_28 = arith.constant 0 : index
    %51 = vector.load %arg5[%c0_27, %c0_28] : memref<1x256xf32, #tpu.memory_space<vmem>>, vector<1x256xf32>
    %52 = vector.broadcast %51 : vector<1x256xf32> to vector<16x256xf32>
    %53 = arith.addf %50, %52 : vector<16x256xf32>
    %54 = vector.shape_cast %0 : vector<1x16x256xf32> to vector<16x256xf32>
    %55 = arith.addf %53, %54 : vector<16x256xf32>
    %56 = vector.shape_cast %55 : vector<16x256xf32> to vector<1x16x256xf32>
    %c0_29 = arith.constant 0 : index
    %c0_30 = arith.constant 0 : index
    %c0_31 = arith.constant 0 : index
    %57 = vector.load %arg6[%c0_29, %c0_30, %c0_31] : memref<1x16x256xf32, #tpu.memory_space<vmem>>, vector<1x16x256xf32>
    tpu.vector_store %arg6[%c0_29, %c0_30, %c0_31], %56 {strides = array<i32>} : memref<1x16x256xf32, #tpu.memory_space<vmem>>, vector<1x16x256xf32>,
    return
  }
  func.func @transform_0(%arg0: i32) -> (i32, i32, i32) {
    %c0_i32 = arith.constant 0 : i32
    %c0_i32_0 = arith.constant 0 : i32
    %c0_i32_1 = arith.constant 0 : i32
    return %arg0, %c0_i32, %c0_i32_0 : i32, i32, i32
  }
  func.func @transform_1(%arg0: i32) -> (i32, i32, i32) {
    %c0_i32 = arith.constant 0 : i32
    %c0_i32_0 = arith.constant 0 : i32
    %c0_i32_1 = arith.constant 0 : i32
    %c0_i32_2 = arith.constant 0 : i32
    return %c0_i32, %c0_i32_0, %c0_i32_1 : i32, i32, i32
  }
  func.func @transform_2(%arg0: i32) -> (i32, i32) {
    %c0_i32 = arith.constant 0 : i32
    %c0_i32_0 = arith.constant 0 : i32
    %c0_i32_1 = arith.constant 0 : i32
    return %c0_i32, %c0_i32_0 : i32, i32
  }
  func.func @transform_3(%arg0: i32) -> (i32, i32, i32) {
    %c0_i32 = arith.constant 0 : i32
    %c0_i32_0 = arith.constant 0 : i32
    %c0_i32_1 = arith.constant 0 : i32
    %c0_i32_2 = arith.constant 0 : i32
    return %c0_i32, %c0_i32_0, %c0_i32_1 : i32, i32, i32
  }
  func.func @transform_4(%arg0: i32) -> (i32, i32) {
    %c0_i32 = arith.constant 0 : i32
    %c0_i32_0 = arith.constant 0 : i32
    %c0_i32_1 = arith.constant 0 : i32
    return %c0_i32, %c0_i32_0 : i32, i32
  }
  func.func @transform_5(%arg0: i32) -> (i32, i32, i32) {
    %c0_i32 = arith.constant 0 : i32
    %c0_i32_0 = arith.constant 0 : i32
    %c0_i32_1 = arith.constant 0 : i32
    return %arg0, %c0_i32, %c0_i32_0 : i32, i32, i32
  }
}

</mosaic_0001>

<bundles_post_ra>
// kernel: tpu_custom_call.1
= control target key start
LH: loop header
LB: loop body
LE: loop exit
PB: predicated region body
PF: predicated region fallthrough
CT: control target
= control target key end

     0   :  { %10 = vsyncpa [#allocation3], 0  ;;  %s2483_s0 = inlined_call_operand.hbm [shape: f32[8,16,256], index: 0, kind: input, shape index: {}]   ;;  %s2484_s1 = inlined_call_operand.hbm [shape: f32[3,256,256], index: 1, kind: input, shape index: {}]   ;;  %s2485_s2 = inlined_call_operand.vmem [shape: f32[1,256], index: 2, kind: input, shape index: {}]   ;;  %s2486_s3 = inlined_call_operand.hbm [shape: f32[3,256,256], index: 3, kind: input, shape index: {}]   ;;  %s2487_s4 = inlined_call_operand.vmem [shape: f32[1,256], index: 4, kind: input, shape index: {}]   ;;  %s2488_s5 = inlined_call_operand.hbm [shape: f32[8,16,256], index: 5, kind: output, shape index: {}]  }
   0x1   :  { %12 = vsyncpa [#allocation3 + $0x1], 0 }
   0x2   :  { %13 = vsyncpa [#allocation6], 0 }
   0x3   :  { %14 = vsyncpa [#allocation4], 0 }
   0x4   :  { %16 = vsyncpa [#allocation4 + $0x1], 0  ;;  %s2090_s18 = smov 0   ;;  %s2092_s19 = smov 0  }
   0x5   :  { %s2094_s20 = smov 0   ;;  %s2096_s21 = smov 0  }
   0x6 LB: > { %s2111_s22 = sadd.s32 4294967295, %s2050_s21   ;;  %s1391_s23 = sadd.s32 4294967294, %s2050_s21   ;;  %s2050_s21 = sphi %s2096_s21, %s2509_s21   ;;  %s2046_s20 = sphi %s2094_s20, %s2508_s20   ;;  %s2042_s19 = sphi %s2092_s19, %s2507_s19   ;;  %s2038_s18 = sphi %s2090_s18, %s2506_s18  }
   0x7   : > { %p42_p0 = scmp.ne.s32.totalorder %s2042_s19, %s2038_s18  ;;  %p2489_p1 = scmp.eq.s32.totalorder %s2111_s22, 0 }
   0x8   : > { %p156_p3 = scmp.eq.s32.totalorder %s1391_s23, 7  ;;  %p1392_p5 = scmp.ge.s32.totalorder %s2050_s21, 1 }
   0x9   : > { %p2120_p4 = por %p2489_p1, %p42_p0  ;;  %p163_p7 = scmp.lt.s32.totalorder %s2050_s21, 9 }
   0xa   : > { %p2125_p6 = por %p156_p3, %p42_p0  ;;  %s2052_s27 = smov [#allocation5]  }
   0xb   : > { %s2492_s24 = scalar_select %p2120_p4, 1, 0 }
   0xc   : > { %s2493_s25 = scalar_select %p2125_p6, 1, 0 }
   0xd   : > { %p2130_p8 = pnand %p1392_p5, %p163_p7  ;;  %s175_s28 = sshll.u32 %s2052_s27, 4  ;;  %s176_s28 = int_to_ptr.vmem [resolvable:$true] %s175_s28 }
   0xe   : > { %s2053_s30 = smov [#allocation7]   ;;  %s1894_s9 = scalar_lea.hbm %s2484_s1, 24576 }
   0xf   : > { %s2494_s26 = scalar_select %p2130_p8, 1, 0 }
  0x10   : > { %p1831_p9 = pneg %p2130_p8  ;;  %s191_s6 = sshll.u32 %s2053_s30, 4  ;;  %s2142_s6 = int_to_ptr.vmem [resolvable:$true] %s191_s6 }
  0x11   : > { %p1895_p11 = scmp.ne.s32.totalorder %s2484_s1, %s1894_s9  ;;  %p1901_p3 = scmp.lt.u32.totalorder %s1894_s9, %s2484_s1 }
  0x12   : > { %p2138_p10 = pnand %p1831_p9, %p2489_p1 }
  0x14   : > { %p1896_p12 = pneg %p2138_p10 }
  0x16   : > { %p1897_p13 = pnand %p1896_p12, %p1895_p11 }
  0x18   : > { %p1898_p0 = pneg %p1897_p13 }
  0x1a   : > { %p1903_p5 = pnand %p1901_p3, %p1898_p0 }
  0x1c   : > { %1906 = shalt.err (!%p1903_p5)
}
  0x1d   : > { %s1907_s14 = scalar_lea.vmem %s176_s28, 24576  ;;  %p1915_p2 = scmp.lt.s32.totalorder %s176_s28, %s176_s28 }
  0x1e   : > { %p1908_p7 = scmp.ne.s32.totalorder %s176_s28, %s1907_s14  ;;  %p1916_p6 = scmp.lt.s32.totalorder %s1907_s14, %s1907_s14 }
  0x20   : > { %p1910_p9 = pnand %p1908_p7, %p1896_p12  ;;  %p1917_p4 = por %p1916_p6, %p1915_p2 }
  0x22   : > { %p1911_p1 = pneg %p1910_p9 }
  0x24   : > { %p1918_p8 = pnand %p1917_p4, %p1911_p1 }
  0x26   : > { %1921 = shalt.err (!%p1918_p8)
}
  0x27   : > { %s2054_s15 = smov 256   ;;  %s2055_s16 = smov 16  }
  0x28   : > { %1834 = dma.hbm_to_vmem [thread:$0]  (!%p2138_p10), %s2484_s1, 24576, %s176_s28, [#allocation6], %s2054_s15, %s2054_s15, %s2055_s16  }
  0x29   : > { %s1922_s7 = scalar_lea.hbm %s2486_s3, 24576 }
  0x2a   : > { %p1923_p1 = scmp.ne.s32.totalorder %s2486_s3, %s1922_s7  ;;  %p1929_p6 = scmp.lt.u32.totalorder %s1922_s7, %s2486_s3 }
  0x2c   : > { %p1925_p2 = pnand %p1923_p1, %p1896_p12 }
  0x2e   : > { %p1926_p4 = pneg %p1925_p2 }
  0x30   : > { %p1931_p8 = pnand %p1929_p6, %p1926_p4 }
  0x32   : > { %1934 = shalt.err (!%p1931_p8)
}
  0x33   : > { %s1935_s28 = scalar_lea.vmem %s2142_s6, 24576  ;;  %p1943_p3 = scmp.lt.s32.totalorder %s2142_s6, %s2142_s6 }
  0x34   : > { %p1936_p11 = scmp.ne.s32.totalorder %s2142_s6, %s1935_s28  ;;  %p1944_p5 = scmp.lt.s32.totalorder %s1935_s28, %s1935_s28 }
  0x36   : > { %p1938_p13 = pnand %p1936_p11, %p1896_p12  ;;  %p1945_p7 = por %p1944_p5, %p1943_p3 }
  0x38   : > { %p1939_p0 = pneg %p1938_p13 }
  0x3a   : > { %p1946_p9 = pnand %p1945_p7, %p1939_p0 }
  0x3c   : > { %1949 = shalt.err (!%p1946_p9)
}
  0x3d   : > { %1837 = dma.hbm_to_vmem [thread:$0]  (!%p2138_p10), %s2486_s3, 24576, %s2142_s6, [#allocation6], %s2054_s15, %s2054_s15, %s2055_s16  }
  0x3e   : > { %s2198_s29 = sadd.s32 1, %s2050_s21   ;;  %s29_s14 = sadd.s32 1, %s2046_s20 }
  0x3f   : > { %s26_s17 = ssub.s32 %s2050_s21, %s2198_s29  ;;  %p36_p12 = scmp.ne.s32.totalorder %s2046_s20, %s2042_s19 }
  0x40   : > { %p27_p1 = scmp.eq.s32.totalorder %s26_s17, 0  ;;  %p37_p2 = scmp.eq.s32.totalorder %s2050_s21, 0 }
  0x41   : > { %p2496_p4 = scmp.eq.s32.totalorder %s2111_s22, 7  ;;  %p1848_p8 = scmp.lt.s32.totalorder %s2050_s21, 8 }
  0x42   : > { %s2214_s27 = scalar_select %p27_p1, %s2046_s20, %s29_s14  }
  0x43   : > { %p2208_p6 = por %p2496_p4, %p36_p12  ;;  %p38_p11 = por %p37_p2, %p36_p12 }
  0x44   : > { %s208_s30 = sand.u32 1, %s2046_s20   ;;  %s1417_s6 = sshll.u32 %s2050_s21, 9 }
  0x45   : > { %s1396_s7 = sshll.u32 %s208_s30, 5  ;;  %s2221_s10 = scalar_lea.hbm %s2483_s0, %s1417_s6 }
  0x46   : > { %s212_s11 = scalar_lea.vmem [#allocation2], %s1396_s7  ;;  %p2225_p10 = pnand %p1848_p8, %p38_p11 }
  0x47   : > { %s219_s28 = sshll.u32 %s212_s11, 4  ;;  %s2229_s13 = scalar_lea.sflag [#allocation3], %s208_s30  ;;  %s2223_s28 = int_to_ptr.vmem [resolvable:$true] %s219_s28 }
  0x48   : > { %s1950_s14 = scalar_lea.hbm %s2221_s10, 512  ;;  %p1952_p0 = pneg %p2225_p10 }
  0x49   : > { %p1951_p13 = scmp.ne.s32.totalorder %s2221_s10, %s1950_s14  ;;  %s1955_s6 = scalar_lea.hbm %s2483_s0, 4096 }
  0x4a   : > { %p1956_p7 = scmp.lt.u32.totalorder %s2221_s10, %s2483_s0  ;;  %p1957_p9 = scmp.lt.u32.totalorder %s1955_s6, %s1950_s14 }
  0x4b   : > { %p1953_p3 = pnand %p1952_p0, %p1951_p13  ;;  %p1959_p1 = scmp.lt.u32.totalorder %s1950_s14, %s2221_s10 }
  0x4c   : > { %p1958_p12 = por %p1957_p9, %p1956_p7 }
  0x4d   : > { %p1954_p5 = pneg %p1953_p3 }
  0x4e   : > { %p1960_p2 = por %p1959_p1, %p1958_p12 }
  0x50   : > { %p1961_p4 = pnand %p1960_p2, %p1954_p5 }
  0x52   : > { %1964 = shalt.err (!%p1961_p4)
}
  0x53   : > { %s1965_s30 = scalar_lea.vmem %s2223_s28, 512  ;;  %s2056_s11 = smov [#allocation2]  }
  0x54   : > { %p1966_p8 = scmp.ne.s32.totalorder %s2223_s28, %s1965_s30  ;;  %s1970_s17 = sshll.u32 %s2056_s11, 4  ;;  %s1971_s17 = int_to_ptr.vmem [resolvable:$false] %s1970_s17 }
  0x55   : > { %s1972_s7 = scalar_lea.vmem %s1971_s17, 1024  ;;  %p1973_p3 = scmp.lt.s32.totalorder %s2223_s28, %s1971_s17 }
  0x56   : > { %p1968_p11 = pnand %p1966_p8, %p1952_p0  ;;  %p1974_p7 = scmp.lt.s32.totalorder %s1972_s7, %s1965_s30 }
  0x58   : > { %p1969_p13 = pneg %p1968_p11  ;;  %p1975_p9 = por %p1974_p7, %p1973_p3 }
  0x5a   : > { %p1976_p12 = pnand %p1975_p9, %p1969_p13 }
  0x5c   : > { %1979 = shalt.err (!%p1976_p12)
}
  0x5d   : > { %1841 = dma.hbm_to_vmem [thread:$0]  (!%p2225_p10), %s2221_s10, 512, %s2223_s28, %s2229_s13, %s2054_s15, %s2054_s15, %s2055_s16  }
  0x5e   : > { %p2499_p0 = scmp.ne.s32.totalorder %s2494_s26, 0 }
  0x5f   : > { %s2263_s14 = sand.u32 (!%p2499_p0), 1, %s2042_s19   ;;  %p2500_p5 = scmp.ne.s32.totalorder (!%p2499_p0), %s2492_s24, 0 }
  0x60   : > { %231 = sbr.rel (%p2499_p0) target bundleno = 894 (0x37e), region = 40  ;;  %s1400_s6 = sshll.u32 (!%p2499_p0), %s2263_s14, 5 }
  0x61   : > { %s234_s8 = scalar_lea.sflag (!%p2499_p0), [#allocation3], %s2263_s14  ;;  %s2269_s12 = scalar_lea.vmem (!%p2499_p0), [#allocation2], %s1400_s6 }
  0x67   : > { %2025 = dma.done.wait (%p2500_p5), %s234_s8, 512  }
  0x68   : > { %2027 = vsyncadd (%p2500_p5), %s234_s8, 4294966784  ;;  %p2501_p10 = scmp.eq.s32.totalorder %s2111_s22, 0 }
  0x6a   : > { %2029 = dma.done.wait (%p2501_p10), [#allocation6], 49152   ;;  %p2502_p1 = pmov %p2501_p10 }
  0x6b   : > { %v363_v0 = vld [vmem:[#allocation5 + $0x208] sm:$0xff]  ;;  %v365_v1 = vld [vmem:[#allocation5 + $0x218] sm:$0xff]  ;;  %v362_v2 = vld [vmem:[#allocation5 + $0x200] sm:$0xff]  ;;  %vm280_vm0 = vcmask 1040384   ;;  %vm430_vm1 = vcmask 1046528   ;;  %vm664_vm3 = vcmask 1045504  }
  0x6c   : > { %2031 = vsyncadd (%p2502_p1), [#allocation6], 4294918144  ;;  %v1419_v3 = vpack.c.bf16 %v365_v1, %v363_v0  ;;  %v364_v4 = vld [vmem:[#allocation5 + $0x210] sm:$0xff]  ;;  %v367_v5 = vld [vmem:[#allocation5 + $0x228] sm:$0xff]  ;;  %s271_s10 = scalar_lea.vmem [#allocation8], %s1400_s6  ;;  %s1418_s13 = sshll.u32 %s2111_s22, 9 }
  0x6d   : > { %v369_v6 = vld [vmem:[#allocation5 + $0x238] sm:$0xff]  ;;  %v1421_v7 = vpack.c.bf16 %v364_v4, %v362_v2  ;;  %v366_v9 = vld [vmem:[#allocation5 + $0x220] sm:$0xff]  ;;  %v368_v10 = vld [vmem:[#allocation5 + $0x230] sm:$0xff]  ;;  %s1299_s28 = sshll.u32 %s271_s10, 4  ;;  %s2439_s11 = scalar_lea.hbm %s2488_s5, %s1418_s13  ;;  %s2433_s28 = int_to_ptr.vmem [resolvable:$true] %s1299_s28 }
  0x6e   : > { %v1423_v8 = vpack.c.bf16 %v369_v6, %v367_v5  ;;  %v371_v11 = vld [vmem:[#allocation5 + $0x248] sm:$0xff]  ;;  %1420 = vmatprep.subr.bf16.mxu0 %v1419_v3  ;;  %v373_v12 = vld [vmem:[#allocation5 + $0x258] sm:$0xff]  ;;  %v1425_v13 = vpack.c.bf16 %v368_v10, %v366_v9  ;;  %v370_v15 = vld [vmem:[#allocation5 + $0x240] sm:$0xff]  ;;  %s1286_s22 = scalar_lea.sflag [#allocation4], %s2263_s14  ;;  %s1980_s17 = scalar_lea.vmem %s2433_s28, 512 }
  0x6f   : > { %1422 = vmatpush1.bf16.msra.mxu0 %v1421_v7  ;;  %v1427_v14 = vpack.c.bf16 %v373_v12, %v371_v11  ;;  %v372_v16 = vld [vmem:[#allocation5 + $0x250] sm:$0xff]  ;;  %v375_v17 = vld [vmem:[#allocation5 + $0x268] sm:$0xff]  ;;  %v377_v18 = vld [vmem:[#allocation5 + $0x278] sm:$0xff]  ;;  %p1981_p2 = scmp.ne.s32.totalorder %s2433_s28, %s1980_s17  ;;  %s2057_s7 = smov [#allocation8]  }
  0x70   : > { %1424 = vmatprep.subr.bf16.mxu0 %v1423_v8  ;;  %v1429_v19 = vpack.c.bf16 %v372_v16, %v370_v15  ;;  %v1431_v20 = vpack.c.bf16 %v377_v18, %v375_v17  ;;  %v374_v21 = vld [vmem:[#allocation5 + $0x260] sm:$0xff]  ;;  %v376_v22 = vld [vmem:[#allocation5 + $0x270] sm:$0xff]  ;;  %v379_v23 = vld [vmem:[#allocation5 + $0x288] sm:$0xff]  ;;  %s1984_s6 = sshll.u32 %s2057_s7, 4  ;;  %s1985_s6 = int_to_ptr.vmem [resolvable:$false] %s1984_s6 }
  0x71   : > { %v381_v24 = vld [vmem:[#allocation5 + $0x298] sm:$0xff]  ;;  %v1433_v25 = vpack.c.bf16 %v376_v22, %v374_v21  ;;  %v378_v27 = vld [vmem:[#allocation5 + $0x280] sm:$0xff]  ;;  %v380_v28 = vld [vmem:[#allocation5 + $0x290] sm:$0xff]  ;;  %p1982_p4 = pnand %p1981_p2, %p2208_p6  ;;  %s1986_s8 = scalar_lea.vmem %s1985_s6, 1024 }
  0x72   : > { %v1435_v26 = vpack.c.bf16 %v381_v24, %v379_v23  ;;  %v383_v29 = vld [vmem:[#allocation5 + $0x2a8] sm:$0xff]  ;;  %v385_v30 = vld [vmem:[#allocation5 + $0x2b8] sm:$0xff]  ;;  %v1437_v31 = vpack.c.bf16 %v380_v28, %v378_v27  ;;  %v382_v33 = vld [vmem:[#allocation5 + $0x2a0] sm:$0xff]  ;;  %p1987_p11 = scmp.lt.s32.totalorder %s2433_s28, %s1985_s6  ;;  %p1988_p13 = scmp.lt.s32.totalorder %s1986_s8, %s1980_s17 }
  0x73   : > { %1426 = vmatpush1.bf16.msra.mxu0 %v1425_v13  ;;  %v1439_v32 = vpack.c.bf16 %v385_v30, %v383_v29  ;;  %v384_v34 = vld [vmem:[#allocation5 + $0x2b0] sm:$0xff]  ;;  %v387_v35 = vld [vmem:[#allocation5 + $0x2c8] sm:$0xff]  ;;  %v389_v36 = vld [vmem:[#allocation5 + $0x2d8] sm:$0xff]  ;;  %p1983_p8 = pneg %p1982_p4 }
  0x74   : > { %1428 = vmatprep.subr.bf16.mxu0 %v1427_v14  ;;  %v1441_v37 = vpack.c.bf16 %v384_v34, %v382_v33  ;;  %v386_v38 = vld [vmem:[#allocation5 + $0x2c0] sm:$0xff]  ;;  %v1443_v39 = vpack.c.bf16 %v389_v36, %v387_v35  ;;  %v388_v40 = vld [vmem:[#allocation5 + $0x2d0] sm:$0xff]  ;;  %v273_v41 = vld [vmem:[%s2269_s12 + $0x8] sm:$0xff]  ;;  %p1989_p3 = por %p1988_p13, %p1987_p11 }
  0x75   : > { %v2281_v42 = vld [vmem:[%s2269_s12 + $0x18] sm:$0xff]  ;;  %v391_v43 = vld [vmem:[#allocation5 + $0x2e8] sm:$0xff]  ;;  %v2283_v45 = vrot.slane %v273_v41, 7  ;;  %v1445_v47 = vpack.c.bf16 %v388_v40, %v386_v38  ;;  %v390_v51 = vld [vmem:[#allocation5 + $0x2e0] sm:$0xff] }
  0x76   : > { %v393_v44 = vld [vmem:[#allocation5 + $0x2f8] sm:$0xff]  ;;  %v285_v46 = vrot.slane %v2281_v42, 7  ;;  %v392_v52 = vld [vmem:[#allocation5 + $0x2f0] sm:$0xff]  ;;  %v395_v55 = vld [vmem:[#allocation5 + $0x308] sm:$0xff]  ;;  %p1990_p7 = pnand %p1989_p3, %p1983_p8 }
  0x77   : > { %1430 = vmatpush1.bf16.msra.mxu0 %v1429_v19  ;;  %v2294_v49 = vsel %vm280_vm0, 0.0, %v2283_v45  ;;  %v1447_v50 = vpack.c.bf16 %v393_v44, %v391_v43  ;;  %v397_v56 = vld [vmem:[#allocation5 + $0x318] sm:$0xff]  ;;  %v1449_v58 = vpack.c.bf16 %v392_v52, %v390_v51  ;;  %v394_v60 = vld [vmem:[#allocation5 + $0x300] sm:$0xff]  ;;  %v396_v61 = vld [vmem:[#allocation5 + $0x310] sm:$0xff] }
  0x78   : > { %1432 = vmatprep.subr.bf16.mxu0 %v1431_v20  ;;  %v2290_v48 = vsel %vm280_vm0, %v2283_v45, %v285_v46  ;;  %v434_v53 = vrot.slane %v2294_v49, 1  ;;  %v1451_v59 = vpack.c.bf16 %v397_v56, %v395_v55  ;;  %v399_v62 = vld [vmem:[#allocation5 + $0x328] sm:$0xff]  ;;  %v401_v63 = vld [vmem:[#allocation5 + $0x338] sm:$0xff]  ;;  %v1453_v0 = vpack.c.bf16 %v396_v61, %v394_v60  ;;  %v398_v2 = vld [vmem:[#allocation5 + $0x320] sm:$0xff] }
  0x79   : > { %v435_v54 = vrot.slane %v2290_v48, 1  ;;  %v1455_v1 = vpack.c.bf16 %v401_v63, %v399_v62  ;;  %v400_v3 = vld [vmem:[#allocation5 + $0x330] sm:$0xff]  ;;  %v403_v4 = vld [vmem:[#allocation5 + $0x348] sm:$0xff]  ;;  %v405_v5 = vld [vmem:[#allocation5 + $0x358] sm:$0xff] }
  0x7a   : > { %v1457_v6 = vpack.c.bf16 %v400_v3, %v398_v2  ;;  %v1459_v7 = vpack.c.bf16 %v405_v5, %v403_v4  ;;  %v402_v8 = vld [vmem:[#allocation5 + $0x340] sm:$0xff]  ;;  %v404_v9 = vld [vmem:[#allocation5 + $0x350] sm:$0xff]  ;;  %v407_v10 = vld [vmem:[#allocation5 + $0x368] sm:$0xff] }
  0x7b   : > { %1434 = vmatpush1.bf16.msra.mxu0 %v1433_v25  ;;  %v436_v57 = vsel %vm430_vm1, %v434_v53, %v435_v54  ;;  %v409_v11 = vld [vmem:[#allocation5 + $0x378] sm:$0xff]  ;;  %v1461_v12 = vpack.c.bf16 %v404_v9, %v402_v8  ;;  %v406_v14 = vld [vmem:[#allocation5 + $0x360] sm:$0xff]  ;;  %v408_v15 = vld [vmem:[#allocation5 + $0x370] sm:$0xff]  ;;  %v2316_v53 = vsel %vm280_vm0, %v285_v46, 0.0 }
  0x7c   : > { %1436 = vmatprep.subr.bf16.mxu0 %v1435_v26  ;;  %509 = vmatprep.mubr.f32.mxu0 %v436_v57  ;;  %v1463_v13 = vpack.c.bf16 %v409_v11, %v407_v10  ;;  %v411_v16 = vld [vmem:[#allocation5 + $0x388] sm:$0xff]  ;;  %v413_v17 = vld [vmem:[#allocation5 + $0x398] sm:$0xff]  ;;  %v1465_v18 = vpack.c.bf16 %v408_v15, %v406_v14  ;;  %v410_v20 = vld [vmem:[#allocation5 + $0x380] sm:$0xff]  ;;  %v439_v61 = vrot.slane %v2316_v53, 1 }
  0x7d   : > { %v1467_v19 = vpack.c.bf16 %v413_v17, %v411_v16  ;;  %v412_v21 = vld [vmem:[#allocation5 + $0x390] sm:$0xff]  ;;  %v415_v22 = vld [vmem:[#allocation5 + $0x3a8] sm:$0xff]  ;;  %v417_v23 = vld [vmem:[#allocation5 + $0x3b8] sm:$0xff] }
  0x7e   : > { %v1469_v24 = vpack.c.bf16 %v412_v21, %v410_v20  ;;  %v1471_v25 = vpack.c.bf16 %v417_v23, %v415_v22  ;;  %v414_v26 = vld [vmem:[#allocation5 + $0x3a0] sm:$0xff]  ;;  %v416_v27 = vld [vmem:[#allocation5 + $0x3b0] sm:$0xff]  ;;  %v419_v28 = vld [vmem:[#allocation5 + $0x3c8] sm:$0xff]  ;;  %v440_v5 = vsel %vm430_vm1, %v435_v54, %v439_v61 }
  0x7f   : > { %1438 = vmatpush1.bf16.msra.mxu0 %v1437_v31  ;;  %v421_v29 = vld [vmem:[#allocation5 + $0x3d8] sm:$0xff]  ;;  %v272_v30 = vld [vmem:[%s2269_s12] sm:$0xff]  ;;  %v274_v31 = vld [vmem:[%s2269_s12 + $0x10] sm:$0xff] }
  0x80   : > { %1440 = vmatprep.subr.bf16.mxu0 %v1439_v32  ;;  %v1473_v32 = vpack.c.bf16 %v416_v27, %v414_v26  ;;  %v1475_v33 = vpack.c.bf16 %v421_v29, %v419_v28  ;;  %v418_v34 = vld [vmem:[#allocation5 + $0x3c0] sm:$0xff]  ;;  %v420_v35 = vld [vmem:[#allocation5 + $0x3d0] sm:$0xff]  ;;  %v2303_v36 = vrot.slane %v272_v30, 7  ;;  %v423_v38 = vld [vmem:[#allocation5 + $0x3e8] sm:$0xff] }
  0x81   : > { %v1477_v40 = vpack.c.bf16 %v420_v35, %v418_v34  ;;  %v422_v43 = vld [vmem:[#allocation5 + $0x3e0] sm:$0xff]  ;;  %v424_v44 = vld [vmem:[#allocation5 + $0x3f0] sm:$0xff]  ;;  %v298_v51 = vld [vmem:[#allocation5 + $0x8] sm:$0xff] }
  0x82   : > { %v300_v52 = vld [vmem:[#allocation5 + $0x18] sm:$0xff]  ;;  %v1481_v55 = vpack.c.bf16 %v424_v44, %v422_v43  ;;  %v299_v60 = vld [vmem:[#allocation5 + $0x10] sm:$0xff]  ;;  %v302_v63 = vld [vmem:[#allocation5 + $0x28] sm:$0xff] }
  0x83   : > { %1442 = vmatpush1.bf16.msra.mxu0 %v1441_v37  ;;  %v283_v37 = vrot.slane %v274_v31, 7  ;;  %v304_v42 = vld [vmem:[#allocation5 + $0x38] sm:$0xff]  ;;  %v301_v3 = vld [vmem:[#allocation5 + $0x20] sm:$0xff]  ;;  %v303_v4 = vld [vmem:[#allocation5 + $0x30] sm:$0xff] }
  0x84   : > { %1444 = vmatprep.subr.bf16.mxu0 %v1443_v39  ;;  %v425_v39 = vld [vmem:[#allocation5 + $0x3f8] sm:$0xff]  ;;  %v1487_v2 = vpack.c.bf16 %v304_v42, %v302_v63  ;;  %v1489_v8 = vpack.c.bf16 %v303_v4, %v301_v3  ;;  %v305_v11 = vld [vmem:[#allocation5 + $0x40] sm:$0xff]  ;;  %vm2331_vm2 = vmneg %vm280_vm0 }
  0x85   : > { %v1479_v41 = vpack.c.bf16 %v425_v39, %v423_v38  ;;  %v2322_v62 = vsel %vm280_vm0, %v283_v37, 0.0  ;;  %v310_v14 = vld [vmem:[#allocation5 + $0x68] sm:$0xff]  ;;  %v312_v15 = vld [vmem:[#allocation5 + $0x78] sm:$0xff]  ;;  %v309_v54 = vld [vmem:[#allocation5 + $0x60] sm:$0xff] }
  0x86   : > { %v311_v16 = vld [vmem:[#allocation5 + $0x70] sm:$0xff]  ;;  %v866_v17 = vld [vmem:[#allocation7 + $0x208] sm:$0xff]  ;;  %v869_v28 = vld [vmem:[#allocation7 + $0x220] sm:$0xff] }
  0x87   : > { %1446 = vmatpush1.bf16.msra.mxu0 %v1445_v47  ;;  %v2307_v47 = vsel %vm280_vm0, %v2303_v36, %v283_v37  ;;  %v867_v22 = vld [vmem:[#allocation7 + $0x210] sm:$0xff]  ;;  %v870_v23 = vld [vmem:[#allocation7 + $0x228] sm:$0xff]  ;;  %v1497_v35 = vpack.c.bf16 %v311_v16, %v309_v54  ;;  %v873_v38 = vld [vmem:[#allocation7 + $0x240] sm:$0xff] }
  0x88   : > { %1448 = vmatprep.subr.bf16.mxu0 %v1447_v50  ;;  %v2311_v50 = vsel %vm280_vm0, 0.0, %v2303_v36  ;;  %v432_v57 = vrot.slane %v2307_v47, 1  ;;  %v871_v29 = vld [vmem:[#allocation7 + $0x230] sm:$0xff]  ;;  %v874_v30 = vld [vmem:[#allocation7 + $0x248] sm:$0xff]  ;;  %v880_v44 = vld [vmem:[#allocation7 + $0x278] sm:$0xff] }
  0x89   : > { %v431_v56 = vrot.slane %v2311_v50, 1  ;;  %v314_v31 = vld [vmem:[#allocation5 + $0x88] sm:$0xff]  ;;  %v1617_v34 = vpack.c.bf16 %v871_v29, %v869_v28  ;;  %v875_v39 = vld [vmem:[#allocation7 + $0x250] sm:$0xff]  ;;  %v321_v4 = vld [vmem:[#allocation5 + $0xc0] sm:$0xff] }
  0x8a   : > { %v878_v43 = vld [vmem:[#allocation7 + $0x268] sm:$0xff]  ;;  %v319_v63 = vld [vmem:[#allocation5 + $0xb0] sm:$0xff]  ;;  %v325_v16 = vld [vmem:[#allocation5 + $0xe0] sm:$0xff] }
  0x8b   : > { %1450 = vmatpush1.bf16.msra.mxu0 %v1449_v58  ;;  %v1483_v58 = vpack.c.bf16 %v300_v52, %v298_v51  ;;  %v433_v46 = vsel %vm430_vm1, %v431_v56, %v432_v57  ;;  %v318_v51 = vld [vmem:[#allocation5 + $0xa8] sm:$0xff]  ;;  %v320_v52 = vld [vmem:[#allocation5 + $0xb8] sm:$0xff]  ;;  %v329_v28 = vld [vmem:[#allocation5 + $0x100] sm:$0xff] }
  0x8c   : > { %1452 = vmatprep.subr.bf16.mxu0 %v1451_v59  ;;  %v297_v59 = vld [vmem:[#allocation5] sm:$0xff]  ;;  %v1503_v61 = vpack.c.bf16 %v320_v52, %v318_v51  ;;  %v882_v42 = vld [vmem:[#allocation7 + $0x288] sm:$0xff]  ;;  %v335_v52 = vld [vmem:[#allocation5 + $0x130] sm:$0xff] }
  0x8f   : > { %1454 = vmatpush1.bf16.msra.mxu0 %v1453_v0  ;;  %v1485_v0 = vpack.c.bf16 %v299_v60, %v297_v59  ;;  %v877_v59 = vld [vmem:[#allocation7 + $0x260] sm:$0xff]  ;;  %v879_v60 = vld [vmem:[#allocation7 + $0x270] sm:$0xff] }
  0x90   : > { %1456 = vmatprep.subr.bf16.mxu0 %v1455_v1  ;;  %v437_v1 = vrot.slane %v2322_v62, 1 }
  0x92   : > { %v438_v9 = vsel %vm430_vm1, %v432_v57, %v437_v1  ;;  %v317_v57 = vld [vmem:[#allocation5 + $0xa0] sm:$0xff]  ;;  %v324_v1 = vld [vmem:[#allocation5 + $0xd8] sm:$0xff] }
  0x93   : > { %1458 = vmatpush1.bf16.msra.mxu0 %v1457_v6  ;;  %v306_v6 = vld [vmem:[#allocation5 + $0x48] sm:$0xff]  ;;  %v1505_v3 = vpack.c.bf16 %v319_v63, %v317_v57 }
  0x94   : > { %1460 = vmatprep.subr.bf16.mxu0 %v1459_v7  ;;  %v308_v7 = vld [vmem:[#allocation5 + $0x58] sm:$0xff]  ;;  %v338_v57 = vld [vmem:[#allocation5 + $0x148] sm:$0xff] }
  0x95   : > { %v1491_v10 = vpack.c.bf16 %v308_v7, %v306_v6  ;;  %v881_v6 = vld [vmem:[#allocation7 + $0x280] sm:$0xff]  ;;  %v883_v7 = vld [vmem:[#allocation7 + $0x290] sm:$0xff] }
  0x97   : > { %1462 = vmatpush1.bf16.msra.mxu0 %v1461_v12  ;;  %v307_v12 = vld [vmem:[#allocation5 + $0x50] sm:$0xff] }
  0x98   : > { %1464 = vmatprep.subr.bf16.mxu0 %v1463_v13  ;;  %v1493_v20 = vpack.c.bf16 %v307_v12, %v305_v11  ;;  %v888_v11 = vld [vmem:[#allocation7 + $0x2b8] sm:$0xff]  ;;  %v326_v12 = vld [vmem:[#allocation5 + $0xe8] sm:$0xff] }
  0x9b   : > { %1466 = vmatpush1.bf16.msra.mxu0 %v1465_v18  ;;  %v868_v18 = vld [vmem:[#allocation7 + $0x218] sm:$0xff] }
  0x9c   : > { %1468 = vmatprep.subr.bf16.mxu0 %v1467_v19  ;;  %v865_v19 = vld [vmem:[#allocation7 + $0x200] sm:$0xff]  ;;  %v1611_v21 = vpack.c.bf16 %v868_v18, %v866_v17 }
  0x9d   : > { %v1613_v26 = vpack.c.bf16 %v867_v22, %v865_v19  ;;  %v885_v18 = vld [vmem:[#allocation7 + $0x2a0] sm:$0xff]  ;;  %v887_v19 = vld [vmem:[#allocation7 + $0x2b0] sm:$0xff]  ;;  %v890_v22 = vld [vmem:[#allocation7 + $0x2c8] sm:$0xff] }
  0x9e   : > { %1612 = vmatprep.subr.bf16.mxu1 %v1611_v21  ;;  %v327_v21 = vld [vmem:[#allocation5 + $0xf0] sm:$0xff] }
  0x9f   : > { %1470 = vmatpush1.bf16.msra.mxu0 %v1469_v24  ;;  %v872_v24 = vld [vmem:[#allocation7 + $0x238] sm:$0xff]  ;;  %1614 = vmatpush1.bf16.msra.mxu1 %v1613_v26  ;;  %v1633_v26 = vpack.c.bf16 %v887_v19, %v885_v18 }
  0xa0   : > { %1472 = vmatprep.subr.bf16.mxu0 %v1471_v25  ;;  %v1495_v25 = vpack.c.bf16 %v312_v15, %v310_v14  ;;  %v1615_v27 = vpack.c.bf16 %v872_v24, %v870_v23  ;;  %v328_v14 = vld [vmem:[#allocation5 + $0xf8] sm:$0xff]  ;;  %v1629_v15 = vpack.c.bf16 %v883_v7, %v881_v6  ;;  %v330_v24 = vld [vmem:[#allocation5 + $0x108] sm:$0xff] }
  0xa1   : > { %v892_v23 = vld [vmem:[#allocation7 + $0x2d8] sm:$0xff] }
  0xa2   : > { %1616 = vmatprep.subr.bf16.mxu1 %v1615_v27  ;;  %v1513_v27 = vpack.c.bf16 %v327_v21, %v325_v16  ;;  %v1635_v29 = vpack.c.bf16 %v892_v23, %v890_v22  ;;  %v346_v16 = vld [vmem:[#allocation5 + $0x188] sm:$0xff]  ;;  %v905_v22 = vld [vmem:[#allocation7 + $0x340] sm:$0xff]  ;;  %v907_v23 = vld [vmem:[#allocation7 + $0x350] sm:$0xff] }
  0xa3   : > { %1474 = vmatpush1.bf16.msra.mxu0 %v1473_v32  ;;  %v316_v32 = vld [vmem:[#allocation5 + $0x98] sm:$0xff]  ;;  %1618 = vmatpush1.bf16.msra.mxu1 %v1617_v34  ;;  %v894_v34 = vld [vmem:[#allocation7 + $0x2e8] sm:$0xff] }
  0xa4   : > { %1476 = vmatprep.subr.bf16.mxu0 %v1475_v33  ;;  %v876_v33 = vld [vmem:[#allocation7 + $0x258] sm:$0xff] }
  0xa5   : > { %v1619_v37 = vpack.c.bf16 %v876_v33, %v874_v30  ;;  %v889_v30 = vld [vmem:[#allocation7 + $0x2c0] sm:$0xff]  ;;  %v331_v33 = vld [vmem:[#allocation5 + $0x110] sm:$0xff] }
  0xa7   : > { %1478 = vmatpush1.bf16.msra.mxu0 %v1477_v40  ;;  %v1499_v40 = vpack.c.bf16 %v316_v32, %v314_v31  ;;  %1620 = vmatprep.subr.bf16.mxu1 %v1619_v37  ;;  %v891_v31 = vld [vmem:[#allocation7 + $0x2d0] sm:$0xff]  ;;  %v336_v37 = vld [vmem:[#allocation5 + $0x138] sm:$0xff] }
  0xa8   : > { %1480 = vmatprep.subr.bf16.mxu0 %v1479_v41  ;;  %v315_v41 = vld [vmem:[#allocation5 + $0x90] sm:$0xff] }
  0xab   : > { %1482 = vmatpush1.bf16.msra.mxu0 %v1481_v55  ;;  %v1621_v55 = vpack.c.bf16 %v875_v39, %v873_v38  ;;  %v1637_v38 = vpack.c.bf16 %v891_v31, %v889_v30  ;;  %v1517_v39 = vpack.c.bf16 %v331_v33, %v329_v28  ;;  %v350_v28 = vld [vmem:[#allocation5 + $0x1a8] sm:$0xff]  ;;  %v1653_v30 = vpack.c.bf16 %v907_v23, %v905_v22  ;;  %v909_v33 = vld [vmem:[#allocation7 + $0x360] sm:$0xff] }
  0xac   : > { %1484 = vmatprep.subr.bf16.mxu0 %v1483_v58  ;;  %v1623_v58 = vpack.c.bf16 %v880_v44, %v878_v43  ;;  %v893_v43 = vld [vmem:[#allocation7 + $0x2e0] sm:$0xff]  ;;  %v895_v44 = vld [vmem:[#allocation7 + $0x2f0] sm:$0xff] }
  0xad   : > { %1622 = vmatpush1.bf16.msra.mxu1 %v1621_v55  ;;  %v898_v55 = vld [vmem:[#allocation7 + $0x308] sm:$0xff] }
  0xae   : > { %510 = vmatmul.mubr.f32.vlgmr.msra.gmra.mrb[0].mxu0 %v433_v46  ;;  %v884_v46 = vld [vmem:[#allocation7 + $0x298] sm:$0xff]  ;;  %1624 = vmatprep.subr.bf16.mxu1 %v1623_v58 }
  0xaf   : > { %1486 = vmatpush1.bf16.msra.mxu0 %v1485_v0  ;;  %515 = vmatprep.mubr.f32.mxu0 %v440_v5  ;;  %v322_v0 = vld [vmem:[#allocation5 + $0xc8] sm:$0xff]  ;;  %v1627_v5 = vpack.c.bf16 %v884_v46, %v882_v42  ;;  %v340_v58 = vld [vmem:[#allocation5 + $0x158] sm:$0xff]  ;;  %v897_v42 = vld [vmem:[#allocation7 + $0x300] sm:$0xff] }
  0xb0   : > { %1488 = vmatprep.subr.bf16.mxu0 %v1487_v2  ;;  %v1625_v2 = vpack.c.bf16 %v879_v60, %v877_v59  ;;  %v1641_v59 = vpack.c.bf16 %v895_v44, %v893_v43  ;;  %v899_v46 = vld [vmem:[#allocation7 + $0x310] sm:$0xff]  ;;  %v353_v44 = vld [vmem:[#allocation5 + $0x1c0] sm:$0xff] }
  0xb1   : > { %v1645_v6 = vpack.c.bf16 %v899_v46, %v897_v42  ;;  %v600_v46 = vld [vmem:[#allocation5 + $0x400] sm:$0xff] }
  0xb2   : > { %516 = vmatmul.mubr.f32.gmra.mrb[2].mxu0 %v438_v9  ;;  %v323_v9 = vld [vmem:[#allocation5 + $0xd0] sm:$0xff]  ;;  %1626 = vmatpush1.bf16.msra.mxu1 %v1625_v2  ;;  %v902_v2 = vld [vmem:[#allocation7 + $0x328] sm:$0xff] }
  0xb3   : > { %1490 = vmatpush1.bf16.msra.mxu0 %v1489_v8  ;;  %1405 = vmatprep.mubr.msk.f32.mxu0 %vm2331_vm2, %v2283_v45  ;;  %v313_v45 = vld [vmem:[#allocation5 + $0x80] sm:$0xff]  ;;  %v1507_v8 = vpack.c.bf16 %v324_v1, %v322_v0  ;;  %v1509_v54 = vpack.c.bf16 %v323_v9, %v321_v4  ;;  %v1523_v0 = vpack.c.bf16 %v340_v58, %v338_v57  ;;  %v339_v1 = vld [vmem:[#allocation5 + $0x150] sm:$0xff]  ;;  %v342_v4 = vld [vmem:[#allocation5 + $0x168] sm:$0xff] }
  0xb4   : > { %1492 = vmatprep.subr.bf16.mxu0 %v1491_v10  ;;  %v1501_v56 = vpack.c.bf16 %v315_v41, %v313_v45  ;;  %v886_v10 = vld [vmem:[#allocation7 + $0x2a8] sm:$0xff]  ;;  %1628 = vmatprep.subr.bf16.mxu1 %v1627_v5  ;;  %v344_v5 = vld [vmem:[#allocation5 + $0x178] sm:$0xff]  ;;  %v357_v58 = vld [vmem:[#allocation5 + $0x1e0] sm:$0xff] }
  0xb5   : > { %v1631_v17 = vpack.c.bf16 %v888_v11, %v886_v10  ;;  %v334_v45 = vld [vmem:[#allocation5 + $0x128] sm:$0xff]  ;;  %v901_v10 = vld [vmem:[#allocation7 + $0x320] sm:$0xff]  ;;  %v903_v11 = vld [vmem:[#allocation7 + $0x330] sm:$0xff] }
  0xb6   : > { %1630 = vmatpush1.bf16.msra.mxu1 %v1629_v15  ;;  %v1519_v51 = vpack.c.bf16 %v336_v37, %v334_v45  ;;  %v906_v15 = vld [vmem:[#allocation7 + $0x348] sm:$0xff]  ;;  %v1649_v18 = vpack.c.bf16 %v903_v11, %v901_v10  ;;  %v349_v45 = vld [vmem:[#allocation5 + $0x1a0] sm:$0xff]  ;;  %v351_v37 = vld [vmem:[#allocation5 + $0x1b0] sm:$0xff] }
  0xb7   : > { %1494 = vmatpush1.bf16.msra.mxu0 %v1493_v20  ;;  %v1511_v20 = vpack.c.bf16 %v328_v14, %v326_v12  ;;  %1632 = vmatprep.subr.bf16.mxu1 %v1631_v17  ;;  %v1527_v12 = vpack.c.bf16 %v344_v5, %v342_v4  ;;  %v343_v14 = vld [vmem:[#allocation5 + $0x170] sm:$0xff]  ;;  %v348_v17 = vld [vmem:[#allocation5 + $0x198] sm:$0xff]  ;;  %v604_v5 = vld [vmem:[#allocation5 + $0x420] sm:$0xff] }
  0xb8   : > { %1496 = vmatprep.subr.bf16.mxu0 %v1495_v25  ;;  %v332_v25 = vld [vmem:[#allocation5 + $0x118] sm:$0xff] }
  0xb9   : > { %v1515_v32 = vpack.c.bf16 %v332_v25, %v330_v24  ;;  %v1531_v24 = vpack.c.bf16 %v348_v17, %v346_v16  ;;  %v347_v25 = vld [vmem:[#allocation5 + $0x190] sm:$0xff]  ;;  %v611_v10 = vld [vmem:[#allocation5 + $0x458] sm:$0xff] }
  0xba   : > { %1634 = vmatpush1.bf16.msra.mxu1 %v1633_v26  ;;  %v910_v26 = vld [vmem:[#allocation7 + $0x368] sm:$0xff]  ;;  %v615_v16 = vld [vmem:[#allocation5 + $0x478] sm:$0xff] }
  0xbb   : > { %1498 = vmatpush1.bf16.msra.mxu0 %v1497_v35  ;;  %v896_v35 = vld [vmem:[#allocation7 + $0x2f8] sm:$0xff]  ;;  %1636 = vmatprep.subr.bf16.mxu1 %v1635_v29 }
  0xbc   : > { %1500 = vmatprep.subr.bf16.mxu0 %v1499_v40  ;;  %v333_v40 = vld [vmem:[#allocation5 + $0x120] sm:$0xff]  ;;  %v1639_v41 = vpack.c.bf16 %v896_v35, %v894_v34  ;;  %v352_v29 = vld [vmem:[#allocation5 + $0x1b8] sm:$0xff]  ;;  %v911_v34 = vld [vmem:[#allocation7 + $0x370] sm:$0xff] }
  0xbd   : > { %v1521_v60 = vpack.c.bf16 %v335_v52, %v333_v40  ;;  %v1535_v35 = vpack.c.bf16 %v352_v29, %v350_v28  ;;  %v1657_v40 = vpack.c.bf16 %v911_v34, %v909_v33  ;;  %v358_v52 = vld [vmem:[#allocation5 + $0x1e8] sm:$0xff]  ;;  %v627_v33 = vld [vmem:[#allocation5 + $0x4d8] sm:$0xff] }
  0xbe   : > { %1638 = vmatpush1.bf16.msra.mxu1 %v1637_v38  ;;  %v354_v38 = vld [vmem:[#allocation5 + $0x1c8] sm:$0xff] }
  0xbf   : > { %1502 = vmatpush1.bf16.msra.mxu0 %v1501_v56  ;;  %v900_v56 = vld [vmem:[#allocation7 + $0x318] sm:$0xff]  ;;  %1640 = vmatprep.subr.bf16.mxu1 %v1639_v41  ;;  %v1537_v41 = vpack.c.bf16 %v351_v37, %v349_v45  ;;  %v624_v45 = vld [vmem:[#allocation5 + $0x4c0] sm:$0xff]  ;;  %v626_v37 = vld [vmem:[#allocation5 + $0x4d0] sm:$0xff] }
  0xc0   : > { %1504 = vmatprep.subr.bf16.mxu0 %v1503_v61  ;;  %v337_v61 = vld [vmem:[#allocation5 + $0x140] sm:$0xff]  ;;  %v1643_v63 = vpack.c.bf16 %v900_v56, %v898_v55  ;;  %v360_v55 = vld [vmem:[#allocation5 + $0x1f8] sm:$0xff] }
  0xc1   : > { %v1525_v7 = vpack.c.bf16 %v339_v1, %v337_v61  ;;  %v1543_v57 = vpack.c.bf16 %v360_v55, %v358_v52  ;;  %v603_v61 = vld [vmem:[#allocation5 + $0x418] sm:$0xff]  ;;  %v605_v1 = vld [vmem:[#allocation5 + $0x428] sm:$0xff] }
  0xc2   : > { %1642 = vmatpush1.bf16.msra.mxu1 %v1641_v59  ;;  %v359_v59 = vld [vmem:[#allocation5 + $0x1f0] sm:$0xff]  ;;  %v635_v52 = vld [vmem:[#allocation5 + $0x518] sm:$0xff] }
  0xc3   : > { %1506 = vmatpush1.bf16.msra.mxu0 %v1505_v3  ;;  %v904_v3 = vld [vmem:[#allocation7 + $0x338] sm:$0xff]  ;;  %1644 = vmatprep.subr.bf16.mxu1 %v1643_v63  ;;  %v1545_v63 = vpack.c.bf16 %v359_v59, %v357_v58  ;;  %v634_v58 = vld [vmem:[#allocation5 + $0x510] sm:$0xff]  ;;  %v637_v59 = vld [vmem:[#allocation5 + $0x528] sm:$0xff] }
  0xc4   : > { %1508 = vmatprep.subr.bf16.mxu0 %v1507_v8  ;;  %v341_v8 = vld [vmem:[#allocation5 + $0x160] sm:$0xff]  ;;  %v1647_v9 = vpack.c.bf16 %v904_v3, %v902_v2  ;;  %v607_v2 = vld [vmem:[#allocation5 + $0x438] sm:$0xff] }
  0xc5   : > { %v1529_v19 = vpack.c.bf16 %v343_v14, %v341_v8  ;;  %v1551_v4 = vpack.c.bf16 %v607_v2, %v605_v1  ;;  %v669_v8 = vrot.slane %v2290_v48, 2  ;;  %v608_v14 = vld [vmem:[#allocation5 + $0x440] sm:$0xff]  ;;  %v643_v1 = vld [vmem:[#allocation5 + $0x558] sm:$0xff] }
  0xc6   : > { %1646 = vmatpush1.bf16.msra.mxu1 %v1645_v6  ;;  %v606_v6 = vld [vmem:[#allocation5 + $0x430] sm:$0xff] }
  0xc7   : > { %1510 = vmatpush1.bf16.msra.mxu0 %v1509_v54  ;;  %v908_v54 = vld [vmem:[#allocation7 + $0x358] sm:$0xff]  ;;  %1648 = vmatprep.subr.bf16.mxu1 %v1647_v9  ;;  %v609_v9 = vld [vmem:[#allocation5 + $0x448] sm:$0xff]  ;;  %v1553_v11 = vpack.c.bf16 %v606_v6, %v604_v5  ;;  %v642_v5 = vld [vmem:[#allocation5 + $0x550] sm:$0xff] }
  0xc8   : > { %1512 = vmatprep.subr.bf16.mxu0 %v1511_v20  ;;  %v345_v20 = vld [vmem:[#allocation5 + $0x180] sm:$0xff]  ;;  %v1651_v21 = vpack.c.bf16 %v908_v54, %v906_v15  ;;  %v610_v15 = vld [vmem:[#allocation5 + $0x450] sm:$0xff]  ;;  %v613_v54 = vld [vmem:[#allocation5 + $0x468] sm:$0xff] }
  0xc9   : > { %v1533_v31 = vpack.c.bf16 %v347_v25, %v345_v20  ;;  %v1557_v17 = vpack.c.bf16 %v610_v15, %v608_v14  ;;  %v617_v20 = vld [vmem:[#allocation5 + $0x488] sm:$0xff]  ;;  %v618_v25 = vld [vmem:[#allocation5 + $0x490] sm:$0xff]  ;;  %v651_v15 = vld [vmem:[#allocation5 + $0x598] sm:$0xff] }
  0xca   : > { %1650 = vmatpush1.bf16.msra.mxu1 %v1649_v18  ;;  %v612_v18 = vld [vmem:[#allocation5 + $0x460] sm:$0xff]  ;;  %v645_v6 = vld [vmem:[#allocation5 + $0x568] sm:$0xff] }
  0xcb   : > { %1514 = vmatpush1.bf16.msra.mxu0 %v1513_v27  ;;  %v912_v27 = vld [vmem:[#allocation7 + $0x378] sm:$0xff]  ;;  %1652 = vmatprep.subr.bf16.mxu1 %v1651_v21  ;;  %v649_v14 = vld [vmem:[#allocation5 + $0x588] sm:$0xff] }
  0xcc   : > { %1516 = vmatprep.subr.bf16.mxu0 %v1515_v32  ;;  %v1655_v32 = vpack.c.bf16 %v912_v27, %v910_v26  ;;  %v619_v21 = vld [vmem:[#allocation5 + $0x498] sm:$0xff]  ;;  %v621_v26 = vld [vmem:[#allocation5 + $0x4a8] sm:$0xff] }
  0xcd   : > { %v1563_v23 = vpack.c.bf16 %v619_v21, %v617_v20  ;;  %v623_v27 = vld [vmem:[#allocation5 + $0x4b8] sm:$0xff]  ;;  %v652_v21 = vld [vmem:[#allocation5 + $0x5a0] sm:$0xff] }
  0xce   : > { %1654 = vmatpush1.bf16.msra.mxu1 %v1653_v30  ;;  %v1567_v29 = vpack.c.bf16 %v623_v27, %v621_v26  ;;  %v620_v30 = vld [vmem:[#allocation5 + $0x4a0] sm:$0xff] }
  0xcf   : > { %1518 = vmatpush1.bf16.msra.mxu0 %v1517_v39  ;;  %v356_v39 = vld [vmem:[#allocation5 + $0x1d8] sm:$0xff]  ;;  %1656 = vmatprep.subr.bf16.mxu1 %v1655_v32  ;;  %v625_v32 = vld [vmem:[#allocation5 + $0x4c8] sm:$0xff]  ;;  %v656_v27 = vld [vmem:[#allocation5 + $0x5c0] sm:$0xff] }
  0xd0   : > { %1520 = vmatprep.subr.bf16.mxu0 %v1519_v51  ;;  %v1539_v43 = vpack.c.bf16 %v356_v39, %v354_v38  ;;  %v355_v51 = vld [vmem:[#allocation5 + $0x1d0] sm:$0xff]  ;;  %v629_v38 = vld [vmem:[#allocation5 + $0x4e8] sm:$0xff]  ;;  %v631_v39 = vld [vmem:[#allocation5 + $0x4f8] sm:$0xff] }
  0xd1   : > { %v1541_v56 = vpack.c.bf16 %v355_v51, %v353_v44  ;;  %v630_v44 = vld [vmem:[#allocation5 + $0x4f0] sm:$0xff]  ;;  %v633_v51 = vld [vmem:[#allocation5 + $0x508] sm:$0xff] }
  0xd2   : > { %1658 = vmatpush1.bf16.msra.mxu1 %v1657_v40  ;;  %v1573_v40 = vpack.c.bf16 %v626_v37, %v624_v45  ;;  %v666_v37 = vrot.slane %v2307_v47, 2 }
  0xd3   : > { %1522 = vmatpush1.bf16.msra.mxu0 %v1521_v60  ;;  %v601_v60 = vld [vmem:[#allocation5 + $0x408] sm:$0xff] }
  0xd4   : > { %1524 = vmatprep.subr.bf16.mxu0 %v1523_v0  ;;  %v1547_v42 = vpack.c.bf16 %v603_v61, %v601_v60  ;;  %v602_v0 = vld [vmem:[#allocation5 + $0x410] sm:$0xff]  ;;  %v639_v60 = vld [vmem:[#allocation5 + $0x538] sm:$0xff] }
  0xd5   : > { %v1549_v3 = vpack.c.bf16 %v602_v0, %v600_v46  ;;  %v638_v46 = vld [vmem:[#allocation5 + $0x530] sm:$0xff]  ;;  %v641_v0 = vld [vmem:[#allocation5 + $0x548] sm:$0xff] }
  0xd7   : > { %1526 = vmatpush1.bf16.msra.mxu0 %v1525_v7  ;;  %v668_v7 = vrot.slane %v2294_v49, 2 }
  0xd8   : > { %1528 = vmatprep.subr.bf16.mxu0 %v1527_v12  ;;  %v1555_v12 = vpack.c.bf16 %v611_v10, %v609_v9 }
  0xd9   : > { %v670_v49 = vsel %vm664_vm3, %v668_v7, %v669_v8  ;;  %v647_v7 = vld [vmem:[#allocation5 + $0x578] sm:$0xff] }
  0xda   : > { %v1591_v10 = vpack.c.bf16 %v647_v7, %v645_v6  ;;  %v803_v6 = vld [vmem:[#allocation7 + $0x18] sm:$0xff] }
  0xdb   : > { %1530 = vmatpush1.bf16.msra.mxu0 %v1529_v19  ;;  %v614_v19 = vld [vmem:[#allocation5 + $0x470] sm:$0xff] }
  0xdc   : > { %1532 = vmatprep.subr.bf16.mxu0 %v1531_v24  ;;  %v1561_v22 = vpack.c.bf16 %v614_v19, %v612_v18  ;;  %v616_v24 = vld [vmem:[#allocation5 + $0x480] sm:$0xff]  ;;  %v655_v18 = vld [vmem:[#allocation5 + $0x5b8] sm:$0xff] }
  0xdd   : > { %v1565_v28 = vpack.c.bf16 %v618_v25, %v616_v24  ;;  %v659_v24 = vld [vmem:[#allocation5 + $0x5d8] sm:$0xff] }
  0xdf   : > { %1534 = vmatpush1.bf16.msra.mxu0 %v1533_v31  ;;  %v622_v31 = vld [vmem:[#allocation5 + $0x4b0] sm:$0xff] }
  0xe0   : > { %1536 = vmatprep.subr.bf16.mxu0 %v1535_v35  ;;  %v1569_v34 = vpack.c.bf16 %v622_v31, %v620_v30  ;;  %v1571_v35 = vpack.c.bf16 %v627_v33, %v625_v32  ;;  %v663_v30 = vld [vmem:[#allocation5 + $0x5f8] sm:$0xff]  ;;  %v660_v33 = vld [vmem:[#allocation5 + $0x5e0] sm:$0xff] }
  0xe3   : > { %1538 = vmatpush1.bf16.msra.mxu0 %v1537_v41  ;;  %v1575_v41 = vpack.c.bf16 %v631_v39, %v629_v38  ;;  %v673_v38 = vrot.slane %v2316_v53, 2 }
  0xe4   : > { %1540 = vmatprep.subr.bf16.mxu0 %v1539_v43  ;;  %v628_v43 = vld [vmem:[#allocation5 + $0x4e0] sm:$0xff] }
  0xe5   : > { %v1577_v55 = vpack.c.bf16 %v630_v44, %v628_v43  ;;  %v914_v43 = vld [vmem:[#allocation7 + $0x388] sm:$0xff]  ;;  %v916_v44 = vld [vmem:[#allocation7 + $0x398] sm:$0xff] }
  0xe7   : > { %1542 = vmatpush1.bf16.msra.mxu0 %v1541_v56  ;;  %v1579_v56 = vpack.c.bf16 %v635_v52, %v633_v51  ;;  %v913_v51 = vld [vmem:[#allocation7 + $0x380] sm:$0xff]  ;;  %v915_v52 = vld [vmem:[#allocation7 + $0x390] sm:$0xff] }
  0xe8   : > { %1544 = vmatprep.subr.bf16.mxu0 %v1543_v57  ;;  %v632_v57 = vld [vmem:[#allocation5 + $0x500] sm:$0xff]  ;;  %v1661_v53 = vpack.c.bf16 %v915_v52, %v913_v51 }
  0xe9   : > { %v1581_v61 = vpack.c.bf16 %v634_v58, %v632_v57  ;;  %v917_v57 = vld [vmem:[#allocation7 + $0x3a0] sm:$0xff]  ;;  %v922_v58 = vld [vmem:[#allocation7 + $0x3c8] sm:$0xff] }
  0xeb   : > { %1546 = vmatpush1.bf16.msra.mxu0 %v1545_v63  ;;  %v1583_v63 = vpack.c.bf16 %v639_v60, %v637_v59  ;;  %v924_v59 = vld [vmem:[#allocation7 + $0x3d8] sm:$0xff] }
  0xec   : > { %1548 = vmatprep.subr.bf16.mxu0 %v1547_v42  ;;  %v636_v42 = vld [vmem:[#allocation5 + $0x520] sm:$0xff]  ;;  %v1667_v60 = vpack.c.bf16 %v924_v59, %v922_v58 }
  0xed   : > { %v1585_v2 = vpack.c.bf16 %v638_v46, %v636_v42  ;;  %v926_v46 = vld [vmem:[#allocation7 + $0x3e8] sm:$0xff] }
  0xee   : > { %1407 = vmatmul.mubr.msk.f32.vlgmr.msra.gmra.mrb[0].mxu0 %vm2331_vm2, %v2303_v36  ;;  %v1559_v36 = vpack.c.bf16 %v615_v16, %v613_v54  ;;  %v1595_v54 = vpack.c.bf16 %v651_v15, %v649_v14  ;;  %v648_v16 = vld [vmem:[#allocation5 + $0x580] sm:$0xff] }
  0xef   : > { %1550 = vmatpush1.bf16.msra.mxu0 %v1549_v3  ;;  %592 = vmatprep.mubr.f32.mxu0 %v2290_v48  ;;  %v1587_v3 = vpack.c.bf16 %v643_v1, %v641_v0  ;;  %v919_v48 = vld [vmem:[#allocation7 + $0x3b0] sm:$0xff]  ;;  %v928_v0 = vld [vmem:[#allocation7 + $0x3f8] sm:$0xff] }
  0xf0   : > { %1552 = vmatprep.subr.bf16.mxu0 %v1551_v4  ;;  %v640_v4 = vld [vmem:[#allocation5 + $0x540] sm:$0xff]  ;;  %v1671_v1 = vpack.c.bf16 %v928_v0, %v926_v46  ;;  %v815_v46 = vld [vmem:[#allocation7 + $0x78] sm:$0xff] }
  0xf1   : > { %v1589_v9 = vpack.c.bf16 %v642_v5, %v640_v4  ;;  %v801_v5 = vld [vmem:[#allocation7 + $0x8] sm:$0xff] }
  0xf2   : > { %593 = vmatmul.mubr.f32.gmra.mrb[2].mxu0 %v2307_v47  ;;  %v1659_v47 = vpack.c.bf16 %v916_v44, %v914_v43  ;;  %v1675_v7 = vpack.c.bf16 %v803_v6, %v801_v5  ;;  %v819_v5 = vld [vmem:[#allocation7 + $0x98] sm:$0xff] }
  0xf3   : > { %1554 = vmatpush1.bf16.msra.mxu0 %v1553_v11  ;;  %743 = vmatprep.mubr.f32.mxu0 %v670_v49  ;;  %v644_v11 = vld [vmem:[#allocation5 + $0x560] sm:$0xff] }
  0xf4   : > { %1556 = vmatprep.subr.bf16.mxu0 %v1555_v12  ;;  %v646_v12 = vld [vmem:[#allocation5 + $0x570] sm:$0xff]  ;;  %1660 = vmatprep.subr.bf16.mxu1 %v1659_v47 }
  0xf5   : > { %v1593_v49 = vpack.c.bf16 %v646_v12, %v644_v11  ;;  %1662 = vmatpush1.bf16.msra.mxu1 %v1661_v53  ;;  %v760_v12 = vld [vmem:[%s2485_s2] sm:$0x3] }
  0xf6   : > { %v804_v53 = vld [vmem:[#allocation7 + $0x20] sm:$0xff] }
  0xf7   : > { %1558 = vmatpush1.bf16.msra.mxu0 %v1557_v17  ;;  %v650_v17 = vld [vmem:[#allocation5 + $0x590] sm:$0xff] }
  0xf8   : > { %1560 = vmatprep.subr.bf16.mxu0 %v1559_v36  ;;  %v653_v36 = vld [vmem:[#allocation5 + $0x5a8] sm:$0xff]  ;;  %v1597_v19 = vpack.c.bf16 %v650_v17, %v648_v16 }
  0xf9   : > { %v1599_v20 = vpack.c.bf16 %v655_v18, %v653_v36 }
  0xfb   : > { %1562 = vmatpush1.bf16.msra.mxu0 %v1561_v22  ;;  %v654_v22 = vld [vmem:[#allocation5 + $0x5b0] sm:$0xff] }
  0xfc   : > { %1564 = vmatprep.subr.bf16.mxu0 %v1563_v23  ;;  %v657_v23 = vld [vmem:[#allocation5 + $0x5c8] sm:$0xff]  ;;  %v1601_v25 = vpack.c.bf16 %v654_v22, %v652_v21 }
  0xfd   : > { %v1603_v26 = vpack.c.bf16 %v659_v24, %v657_v23 }
  0xff   : > { %1566 = vmatpush1.bf16.msra.mxu0 %v1565_v28  ;;  %v658_v28 = vld [vmem:[#allocation5 + $0x5d0] sm:$0xff] }
 0x100   : > { %1568 = vmatprep.subr.bf16.mxu0 %v1567_v29  ;;  %v661_v29 = vld [vmem:[#allocation5 + $0x5e8] sm:$0xff]  ;;  %v1605_v31 = vpack.c.bf16 %v658_v28, %v656_v27 }
 0x101   : > { %v1607_v32 = vpack.c.bf16 %v663_v30, %v661_v29 }
 0x103   : > { %1570 = vmatpush1.bf16.msra.mxu0 %v1569_v34  ;;  %v662_v34 = vld [vmem:[#allocation5 + $0x5f0] sm:$0xff] }
 0x104   : > { %1572 = vmatprep.subr.bf16.mxu0 %v1571_v35  ;;  %v665_v35 = vrot.slane %v2311_v50, 2  ;;  %v1609_v45 = vpack.c.bf16 %v662_v34, %v660_v33  ;;  %v800_v33 = vld [vmem:[#allocation7] sm:$0xff]  ;;  %v802_v34 = vld [vmem:[#allocation7 + $0x10] sm:$0xff] }
 0x105   : > { %v1677_v47 = vpack.c.bf16 %v802_v34, %v800_v33  ;;  %v830_v33 = vld [vmem:[#allocation7 + $0xf0] sm:$0xff]  ;;  %v833_v34 = vld [vmem:[#allocation7 + $0x108] sm:$0xff] }
 0x106   : > { %v667_v39 = vsel %vm664_vm3, %v665_v35, %v666_v37 }
 0x107   : > { %1574 = vmatpush1.bf16.msra.mxu0 %v1573_v40  ;;  %v671_v40 = vrot.slane %v2322_v62, 2 }
 0x108   : > { %1576 = vmatprep.subr.bf16.mxu0 %v1575_v41  ;;  %v674_v41 = vsel %vm664_vm3, %v669_v8, %v673_v38  ;;  %v1665_v8 = vpack.c.bf16 %v919_v48, %v917_v57  ;;  %v807_v38 = vld [vmem:[#allocation7 + $0x38] sm:$0xff]  ;;  %v809_v57 = vld [vmem:[#allocation7 + $0x48] sm:$0xff] }
 0x109   : > { %v672_v50 = vsel %vm664_vm3, %v666_v37, %v671_v40  ;;  %v805_v37 = vld [vmem:[#allocation7 + $0x28] sm:$0xff]  ;;  %v811_v48 = vld [vmem:[#allocation7 + $0x58] sm:$0xff] }
 0x10a   : > { %v1679_v52 = vpack.c.bf16 %v807_v38, %v805_v37  ;;  %v1683_v59 = vpack.c.bf16 %v811_v48, %v809_v57  ;;  %v840_v48 = vld [vmem:[#allocation7 + $0x140] sm:$0xff] }
 0x10b   : > { %1578 = vmatpush1.bf16.msra.mxu0 %v1577_v55  ;;  %v918_v55 = vld [vmem:[#allocation7 + $0x3a8] sm:$0xff] }
 0x10c   : > { %1580 = vmatprep.subr.bf16.mxu0 %v1579_v56  ;;  %v920_v56 = vld [vmem:[#allocation7 + $0x3b8] sm:$0xff] }
 0x10d   : > { %v1663_v62 = vpack.c.bf16 %v920_v56, %v918_v55  ;;  %v806_v55 = vld [vmem:[#allocation7 + $0x30] sm:$0xff] }
 0x10e   : > { %v1681_v58 = vpack.c.bf16 %v806_v55, %v804_v53  ;;  %v838_v53 = vld [vmem:[#allocation7 + $0x130] sm:$0xff]  ;;  %v841_v55 = vld [vmem:[#allocation7 + $0x148] sm:$0xff] }
 0x10f   : > { %1582 = vmatpush1.bf16.msra.mxu0 %v1581_v61  ;;  %1664 = vmatprep.subr.bf16.mxu1 %v1663_v62  ;;  %v921_v61 = vld [vmem:[#allocation7 + $0x3c0] sm:$0xff] }
 0x110   : > { %1584 = vmatprep.subr.bf16.mxu0 %v1583_v63  ;;  %1666 = vmatpush1.bf16.msra.mxu1 %v1665_v8  ;;  %v923_v63 = vld [vmem:[#allocation7 + $0x3d0] sm:$0xff] }
 0x111   : > { %v1669_v42 = vpack.c.bf16 %v923_v63, %v921_v61  ;;  %1668 = vmatprep.subr.bf16.mxu1 %v1667_v60  ;;  %v808_v60 = vld [vmem:[#allocation7 + $0x40] sm:$0xff]  ;;  %v810_v61 = vld [vmem:[#allocation7 + $0x50] sm:$0xff] }
 0x112   : > { %v1685_v0 = vpack.c.bf16 %v810_v61, %v808_v60 }
 0x113   : > { %1586 = vmatpush1.bf16.msra.mxu0 %v1585_v2  ;;  %v925_v2 = vld [vmem:[#allocation7 + $0x3e0] sm:$0xff] }
 0x114   : > { %1588 = vmatprep.subr.bf16.mxu0 %v1587_v3  ;;  %1670 = vmatpush1.bf16.msra.mxu1 %v1669_v42  ;;  %v927_v3 = vld [vmem:[#allocation7 + $0x3f0] sm:$0xff]  ;;  %v813_v42 = vld [vmem:[#allocation7 + $0x68] sm:$0xff] }
 0x115   : > { %v1673_v4 = vpack.c.bf16 %v927_v3, %v925_v2  ;;  %1672 = vmatprep.subr.bf16.mxu1 %v1671_v1  ;;  %v1687_v1 = vpack.c.bf16 %v815_v46, %v813_v42  ;;  %v812_v2 = vld [vmem:[#allocation7 + $0x60] sm:$0xff]  ;;  %v814_v3 = vld [vmem:[#allocation7 + $0x70] sm:$0xff]  ;;  %v849_v46 = vld [vmem:[#allocation7 + $0x188] sm:$0xff] }
 0x116   : > { %v1689_v6 = vpack.c.bf16 %v814_v3, %v812_v2  ;;  %v846_v42 = vld [vmem:[#allocation7 + $0x170] sm:$0xff]  ;;  %v848_v3 = vld [vmem:[#allocation7 + $0x180] sm:$0xff] }
 0x117   : > { %1590 = vmatpush1.bf16.msra.mxu0 %v1589_v9  ;;  %v762_v9 = vlaneseq }
 0x118   : > { %1592 = vmatprep.subr.bf16.mxu0 %v1591_v10  ;;  %1674 = vmatpush1.bf16.msra.mxu1 %v1673_v4  ;;  %v817_v4 = vld [vmem:[#allocation7 + $0x88] sm:$0xff] }
 0x119   : > { %1676 = vmatprep.subr.bf16.mxu1 %v1675_v7  ;;  %v2357_v10 = vshrl.u32 %v762_v9, 7  ;;  %v1691_v7 = vpack.c.bf16 %v819_v5, %v817_v4  ;;  %v816_v9 = vld [vmem:[#allocation7 + $0x80] sm:$0xff]  ;;  %v850_v4 = vld [vmem:[#allocation7 + $0x190] sm:$0xff]  ;;  %v853_v5 = vld [vmem:[#allocation7 + $0x1a8] sm:$0xff] }
 0x11b   : > { %1594 = vmatpush1.bf16.msra.mxu0 %v1593_v49  ;;  %v764_v11 = vsub.s32 0, %v2357_v10  ;;  %v768_v14 = vsub.s32 1, %v2357_v10 }
 0x11c   : > { %1596 = vmatprep.subr.bf16.mxu0 %v1595_v54 }
 0x11d   : > { %v765_v15 = vrot.slane %v760_v12, %v764_v11  ;;  %v769_v49 = vrot.slane %v760_v12, %v768_v14  ;;  %v818_v12 = vld [vmem:[#allocation7 + $0x90] sm:$0xff] }
 0x11f   : > { %1598 = vmatpush1.bf16.msra.mxu0 %v1597_v19 }
 0x120   : > { %1600 = vmatprep.subr.bf16.mxu0 %v1599_v20 }
 0x123   : > { %1602 = vmatpush1.bf16.msra.mxu0 %v1601_v25 }
 0x124   : > { %1604 = vmatprep.subr.bf16.mxu0 %v1603_v26 }
 0x127   : > { %1606 = vmatpush1.bf16.msra.mxu0 %v1605_v31 }
 0x128   : > { %1608 = vmatprep.subr.bf16.mxu0 %v1607_v32 }
 0x12b   : > { %1610 = vmatpush1.bf16.msra.mxu0 %v1609_v45 }
 0x12e   : > { %744 = vmatmul.mubr.f32.vlgmr.msra.gmra.mrb[0].mxu0 %v667_v39 }
 0x12f   : > { %749 = vmatprep.mubr.f32.mxu0 %v674_v41 }
 0x132   : > { %750 = vmatmul.mubr.f32.gmra.mrb[2].mxu0 %v672_v50 }
 0x201   : > { %v745_v54 = vpop.f32.mrb[0].mxu0 }
 0x202   : > { %v772_v16 = vadd.f32 %v765_v15, %v745_v54  ;;  %v747_v17 = vpop.f32.mrb[1].mxu0  ;;  %v1693_v54 = vpack.c.bf16 %v818_v12, %v816_v9  ;;  %v852_v12 = vld [vmem:[#allocation7 + $0x1a0] sm:$0xff] }
 0x203   : > { %v773_v36 = vadd.f32 %v769_v49, %v747_v17  ;;  %v820_v17 = vld [vmem:[#allocation7 + $0xa0] sm:$0xff] }
 0x204   : > { %v776_v18 = vmax.f32 %v772_v16, 0.0 }
 0x205   : > { %v777_v19 = vmax.f32 %v773_v36, 0.0  ;;  %v751_v20 = vpop.f32.mrb[2].mxu0  ;;  %v822_v36 = vld [vmem:[#allocation7 + $0xb0] sm:$0xff] }
 0x206   : > { %v774_v21 = vadd.f32 %v765_v15, %v751_v20  ;;  %v753_v22 = vpop.f32.mrb[3].mxu0  ;;  %v2368_v25 = vrot.slane %v776_v18, 7  ;;  %v821_v15 = vld [vmem:[#allocation7 + $0xa8] sm:$0xff]  ;;  %v1697_v20 = vpack.c.bf16 %v822_v36, %v820_v17  ;;  %v856_v36 = vld [vmem:[#allocation7 + $0x1c0] sm:$0xff] }
 0x207   : > { %v785_v23 = vrot.slane %v777_v19, 7  ;;  %v775_v24 = vadd.f32 %v769_v49, %v753_v22  ;;  %v823_v49 = vld [vmem:[#allocation7 + $0xb8] sm:$0xff]  ;;  %v825_v18 = vld [vmem:[#allocation7 + $0xc8] sm:$0xff]  ;;  %v824_v22 = vld [vmem:[#allocation7 + $0xc0] sm:$0xff] }
 0x208   : > { %v778_v26 = vmax.f32 %v774_v21, 0.0  ;;  %v2375_v31 = vsel %vm280_vm0, 0.0, %v2368_v25  ;;  %v1695_v16 = vpack.c.bf16 %v823_v49, %v821_v15  ;;  %v827_v19 = vld [vmem:[#allocation7 + $0xd8] sm:$0xff]  ;;  %v854_v15 = vld [vmem:[#allocation7 + $0x1b0] sm:$0xff]  ;;  %v857_v49 = vld [vmem:[#allocation7 + $0x1c8] sm:$0xff] }
 0x209   : > { %v779_v27 = vmax.f32 %v775_v24, 0.0  ;;  %v2371_v29 = vsel %vm280_vm0, 0.0, %v785_v23  ;;  %v933_v44 = vrot.slane %v2375_v31, 1  ;;  %v1699_v21 = vpack.c.bf16 %v827_v19, %v825_v18  ;;  %v829_v24 = vld [vmem:[#allocation7 + $0xe8] sm:$0xff]  ;;  %v858_v18 = vld [vmem:[#allocation7 + $0x1d0] sm:$0xff] }
 0x20a   : > { %v786_v28 = vrot.slane %v778_v26, 7  ;;  %v936_v45 = vrot.slane %v2371_v29, 1  ;;  %v831_v26 = vld [vmem:[#allocation7 + $0xf8] sm:$0xff]  ;;  %v861_v19 = vld [vmem:[#allocation7 + $0x1e8] sm:$0xff] }
 0x20b   : > { %v788_v30 = vrot.slane %v779_v27, 7 }
 0x20c   : > { %v2379_v32 = vsel %vm280_vm0, %v2368_v25, %v786_v28  ;;  %v2386_v39 = vsel %vm280_vm0, %v786_v28, 0.0  ;;  %v1703_v28 = vpack.c.bf16 %v831_v26, %v829_v24  ;;  %v862_v24 = vld [vmem:[#allocation7 + $0x1f0] sm:$0xff]  ;;  %v1103_v26 = vld [vmem:[#allocation7 + $0x408] sm:$0xff] }
 0x20d   : > { %v2382_v35 = vsel %vm280_vm0, %v785_v23, %v788_v30  ;;  %v2389_v40 = vsel %vm280_vm0, %v788_v30, 0.0  ;;  %v934_v50 = vrot.slane %v2379_v32, 1  ;;  %v939_v56 = vrot.slane %v2386_v39, 1  ;;  %v828_v30 = vld [vmem:[#allocation7 + $0xe0] sm:$0xff] }
 0x20e   : > { %v937_v41 = vrot.slane %v2382_v35, 1  ;;  %v941_v43 = vrot.slane %v2389_v40, 1  ;;  %v1705_v37 = vpack.c.bf16 %v830_v33, %v828_v30  ;;  %v1102_v33 = vld [vmem:[#allocation7 + $0x400] sm:$0xff] }
 0x20f   : > { %v935_v62 = vsel %vm430_vm1, %v933_v44, %v934_v50  ;;  %v940_v63 = vsel %vm430_vm1, %v934_v50, %v939_v56  ;;  %v834_v50 = vld [vmem:[#allocation7 + $0x110] sm:$0xff]  ;;  %v839_v44 = vld [vmem:[#allocation7 + $0x138] sm:$0xff] }
 0x210   : > { %v938_v51 = vsel %vm430_vm1, %v936_v45, %v937_v41  ;;  %v942_v8 = vsel %vm430_vm1, %v937_v41, %v941_v43  ;;  %v835_v45 = vld [vmem:[#allocation7 + $0x118] sm:$0xff]  ;;  %v832_v41 = vld [vmem:[#allocation7 + $0x100] sm:$0xff]  ;;  %v837_v43 = vld [vmem:[#allocation7 + $0x128] sm:$0xff] }
 0x211   : > { %1011 = vmatprep.mubr.f32.mxu1 %v938_v51  ;;  %v1707_v38 = vpack.c.bf16 %v835_v45, %v833_v34  ;;  %v1711_v51 = vpack.c.bf16 %v839_v44, %v837_v43  ;;  %v843_v56 = vld [vmem:[#allocation7 + $0x158] sm:$0xff]  ;;  %v1104_v34 = vld [vmem:[#allocation7 + $0x410] sm:$0xff]  ;;  %v1107_v45 = vld [vmem:[#allocation7 + $0x428] sm:$0xff] }
 0x212   : > { %1012 = vmatmul.mubr.f32.vlgmr.msra.gmra.mrb[0].mxu1 %v935_v62  ;;  %v1715_v57 = vpack.c.bf16 %v843_v56, %v841_v55  ;;  %v1108_v43 = vld [vmem:[#allocation7 + $0x430] sm:$0xff]  ;;  %v1111_v44 = vld [vmem:[#allocation7 + $0x448] sm:$0xff]  ;;  %v1110_v56 = vld [vmem:[#allocation7 + $0x440] sm:$0xff] }
 0x213   : > { %1678 = vmatpush1.bf16.msra.mxu1 %v1677_v47  ;;  %1017 = vmatprep.mubr.f32.mxu1 %v942_v8  ;;  %v1709_v47 = vpack.c.bf16 %v834_v50, %v832_v41  ;;  %v842_v8 = vld [vmem:[#allocation7 + $0x150] sm:$0xff]  ;;  %v1106_v50 = vld [vmem:[#allocation7 + $0x420] sm:$0xff] }
 0x214   : > { %1680 = vmatprep.subr.bf16.mxu1 %v1679_v52  ;;  %v836_v52 = vld [vmem:[#allocation7 + $0x120] sm:$0xff]  ;;  %v1717_v60 = vpack.c.bf16 %v842_v8, %v840_v48  ;;  %v1117_v48 = vld [vmem:[#allocation7 + $0x478] sm:$0xff] }
 0x215   : > { %v1713_v62 = vpack.c.bf16 %v838_v53, %v836_v52  ;;  %v1745_v52 = vpack.c.bf16 %v1108_v43, %v1106_v50  ;;  %v1169_v53 = vrot.slane %v2371_v29, 2  ;;  %v1121_v29 = vld [vmem:[#allocation7 + $0x498] sm:$0xff]  ;;  %v1142_v43 = vld [vmem:[#allocation7 + $0x540] sm:$0xff] }
 0x216   : > { %1018 = vmatmul.mubr.f32.gmra.mrb[2].mxu1 %v940_v63  ;;  %v844_v63 = vld [vmem:[#allocation7 + $0x160] sm:$0xff] }
 0x217   : > { %1682 = vmatpush1.bf16.msra.mxu1 %v1681_v58  ;;  %1409 = vmatprep.mubr.msk.f32.mxu1 %vm2331_vm2, %v785_v23  ;;  %v826_v23 = vld [vmem:[#allocation7 + $0xd0] sm:$0xff]  ;;  %v845_v58 = vld [vmem:[#allocation7 + $0x168] sm:$0xff] }
 0x218   : > { %1684 = vmatprep.subr.bf16.mxu1 %v1683_v59  ;;  %v1701_v27 = vpack.c.bf16 %v826_v23, %v824_v22  ;;  %v847_v59 = vld [vmem:[#allocation7 + $0x178] sm:$0xff]  ;;  %v860_v23 = vld [vmem:[#allocation7 + $0x1e0] sm:$0xff] }
 0x219   : > { %v1719_v61 = vpack.c.bf16 %v847_v59, %v845_v58  ;;  %v1114_v58 = vld [vmem:[#allocation7 + $0x460] sm:$0xff]  ;;  %v1116_v59 = vld [vmem:[#allocation7 + $0x470] sm:$0xff] }
 0x21b   : > { %1686 = vmatpush1.bf16.msra.mxu1 %v1685_v0  ;;  %v851_v0 = vld [vmem:[#allocation7 + $0x198] sm:$0xff] }
 0x21c   : > { %1688 = vmatprep.subr.bf16.mxu1 %v1687_v1  ;;  %v1721_v1 = vpack.c.bf16 %v846_v42, %v844_v63  ;;  %v1723_v2 = vpack.c.bf16 %v851_v0, %v849_v46  ;;  %v1118_v42 = vld [vmem:[#allocation7 + $0x480] sm:$0xff]  ;;  %v1120_v46 = vld [vmem:[#allocation7 + $0x490] sm:$0xff]  ;;  %v1123_v0 = vld [vmem:[#allocation7 + $0x4a8] sm:$0xff] }
 0x21f   : > { %1690 = vmatpush1.bf16.msra.mxu1 %v1689_v6  ;;  %v855_v6 = vld [vmem:[#allocation7 + $0x1b8] sm:$0xff] }
 0x220   : > { %1692 = vmatprep.subr.bf16.mxu1 %v1691_v7  ;;  %v1725_v7 = vpack.c.bf16 %v850_v4, %v848_v3  ;;  %v1727_v9 = vpack.c.bf16 %v855_v6, %v853_v5  ;;  %v1122_v4 = vld [vmem:[#allocation7 + $0x4a0] sm:$0xff]  ;;  %v1124_v5 = vld [vmem:[#allocation7 + $0x4b0] sm:$0xff]  ;;  %v1127_v6 = vld [vmem:[#allocation7 + $0x4c8] sm:$0xff] }
 0x223   : > { %1694 = vmatpush1.bf16.msra.mxu1 %v1693_v54  ;;  %v859_v54 = vld [vmem:[#allocation7 + $0x1d8] sm:$0xff] }
 0x224   : > { %1696 = vmatprep.subr.bf16.mxu1 %v1695_v16  ;;  %v1729_v16 = vpack.c.bf16 %v854_v15, %v852_v12  ;;  %v1731_v17 = vpack.c.bf16 %v859_v54, %v857_v49  ;;  %v1126_v15 = vld [vmem:[#allocation7 + $0x4c0] sm:$0xff]  ;;  %v1128_v49 = vld [vmem:[#allocation7 + $0x4d0] sm:$0xff]  ;;  %v1131_v54 = vld [vmem:[#allocation7 + $0x4e8] sm:$0xff] }
 0x227   : > { %1698 = vmatpush1.bf16.msra.mxu1 %v1697_v20  ;;  %v863_v20 = vld [vmem:[#allocation7 + $0x1f8] sm:$0xff] }
 0x228   : > { %1700 = vmatprep.subr.bf16.mxu1 %v1699_v21  ;;  %v1733_v21 = vpack.c.bf16 %v858_v18, %v856_v36  ;;  %v1735_v22 = vpack.c.bf16 %v863_v20, %v861_v19  ;;  %v1130_v18 = vld [vmem:[#allocation7 + $0x4e0] sm:$0xff]  ;;  %v1132_v19 = vld [vmem:[#allocation7 + $0x4f0] sm:$0xff]  ;;  %v1135_v20 = vld [vmem:[#allocation7 + $0x508] sm:$0xff] }
 0x22b   : > { %1702 = vmatpush1.bf16.msra.mxu1 %v1701_v27  ;;  %v1105_v27 = vld [vmem:[#allocation7 + $0x418] sm:$0xff] }
 0x22c   : > { %1704 = vmatprep.subr.bf16.mxu1 %v1703_v28  ;;  %v1737_v28 = vpack.c.bf16 %v862_v24, %v860_v23  ;;  %v1739_v30 = vpack.c.bf16 %v1105_v27, %v1103_v26  ;;  %v1134_v24 = vld [vmem:[#allocation7 + $0x500] sm:$0xff]  ;;  %v1136_v26 = vld [vmem:[#allocation7 + $0x510] sm:$0xff]  ;;  %v1139_v27 = vld [vmem:[#allocation7 + $0x528] sm:$0xff] }
 0x22f   : > { %1706 = vmatpush1.bf16.msra.mxu1 %v1705_v37  ;;  %v1109_v37 = vld [vmem:[#allocation7 + $0x438] sm:$0xff] }
 0x230   : > { %1708 = vmatprep.subr.bf16.mxu1 %v1707_v38  ;;  %v1741_v38 = vpack.c.bf16 %v1104_v34, %v1102_v33  ;;  %v1743_v41 = vpack.c.bf16 %v1109_v37, %v1107_v45  ;;  %v1138_v34 = vld [vmem:[#allocation7 + $0x520] sm:$0xff]  ;;  %v1140_v45 = vld [vmem:[#allocation7 + $0x530] sm:$0xff]  ;;  %v1143_v37 = vld [vmem:[#allocation7 + $0x548] sm:$0xff] }
 0x233   : > { %1710 = vmatpush1.bf16.msra.mxu1 %v1709_v47  ;;  %v1113_v47 = vld [vmem:[#allocation7 + $0x458] sm:$0xff] }
 0x234   : > { %1712 = vmatprep.subr.bf16.mxu1 %v1711_v51  ;;  %v1170_v51 = vrot.slane %v2382_v35, 2  ;;  %v1747_v55 = vpack.c.bf16 %v1113_v47, %v1111_v44  ;;  %v1144_v44 = vld [vmem:[#allocation7 + $0x550] sm:$0xff]  ;;  %v1147_v47 = vld [vmem:[#allocation7 + $0x568] sm:$0xff] }
 0x236   : > { %v1171_v13 = vsel %vm664_vm3, %v1169_v53, %v1170_v51  ;;  %v1781_v53 = vpack.c.bf16 %v1144_v44, %v1142_v43 }
 0x237   : > { %1714 = vmatpush1.bf16.msra.mxu1 %v1713_v62  ;;  %v1112_v62 = vld [vmem:[#allocation7 + $0x450] sm:$0xff] }
 0x238   : > { %1716 = vmatprep.subr.bf16.mxu1 %v1715_v57  ;;  %v1115_v57 = vld [vmem:[#allocation7 + $0x468] sm:$0xff] }
 0x239   : > { %v1751_v8 = vpack.c.bf16 %v1117_v48, %v1115_v57  ;;  %v1151_v57 = vld [vmem:[#allocation7 + $0x588] sm:$0xff]  ;;  %v1153_v48 = vld [vmem:[#allocation7 + $0x598] sm:$0xff] }
 0x23b   : > { %1718 = vmatpush1.bf16.msra.mxu1 %v1717_v60  ;;  %v1119_v60 = vld [vmem:[#allocation7 + $0x488] sm:$0xff] }
 0x23c   : > { %1720 = vmatprep.subr.bf16.mxu1 %v1719_v61  ;;  %v1753_v61 = vpack.c.bf16 %v1116_v59, %v1114_v58  ;;  %v1755_v63 = vpack.c.bf16 %v1121_v29, %v1119_v60  ;;  %v1152_v58 = vld [vmem:[#allocation7 + $0x590] sm:$0xff]  ;;  %v1155_v59 = vld [vmem:[#allocation7 + $0x5a8] sm:$0xff]  ;;  %v1157_v60 = vld [vmem:[#allocation7 + $0x5b8] sm:$0xff] }
 0x23f   : > { %1722 = vmatpush1.bf16.msra.mxu1 %v1721_v1  ;;  %v1125_v1 = vld [vmem:[#allocation7 + $0x4b8] sm:$0xff] }
 0x240   : > { %1724 = vmatprep.subr.bf16.mxu1 %v1723_v2  ;;  %v1757_v2 = vpack.c.bf16 %v1120_v46, %v1118_v42  ;;  %v1759_v3 = vpack.c.bf16 %v1125_v1, %v1123_v0  ;;  %v1156_v42 = vld [vmem:[#allocation7 + $0x5b0] sm:$0xff]  ;;  %v1159_v46 = vld [vmem:[#allocation7 + $0x5c8] sm:$0xff]  ;;  %v1161_v0 = vld [vmem:[#allocation7 + $0x5d8] sm:$0xff] }
 0x243   : > { %1726 = vmatpush1.bf16.msra.mxu1 %v1725_v7  ;;  %v1129_v7 = vld [vmem:[#allocation7 + $0x4d8] sm:$0xff] }
 0x244   : > { %1728 = vmatprep.subr.bf16.mxu1 %v1727_v9  ;;  %v1761_v9 = vpack.c.bf16 %v1124_v5, %v1122_v4  ;;  %v1763_v12 = vpack.c.bf16 %v1129_v7, %v1127_v6  ;;  %v1160_v4 = vld [vmem:[#allocation7 + $0x5d0] sm:$0xff]  ;;  %v1163_v5 = vld [vmem:[#allocation7 + $0x5e8] sm:$0xff]  ;;  %v1165_v6 = vld [vmem:[#allocation7 + $0x5f8] sm:$0xff] }
 0x247   : > { %1730 = vmatpush1.bf16.msra.mxu1 %v1729_v16  ;;  %v1133_v16 = vld [vmem:[#allocation7 + $0x4f8] sm:$0xff] }
 0x248   : > { %1732 = vmatprep.subr.bf16.mxu1 %v1731_v17  ;;  %v1765_v17 = vpack.c.bf16 %v1128_v49, %v1126_v15  ;;  %v1767_v36 = vpack.c.bf16 %v1133_v16, %v1131_v54  ;;  %v1164_v15 = vld [vmem:[#allocation7 + $0x5f0] sm:$0xff]  ;;  %v1167_v54 = vrot.slane %v2379_v32, 2  ;;  %v1174_v16 = vrot.slane %v2389_v40, 2 }
 0x24b   : > { %1734 = vmatpush1.bf16.msra.mxu1 %v1733_v21  ;;  %v1137_v21 = vld [vmem:[#allocation7 + $0x518] sm:$0xff] }
 0x24c   : > { %1736 = vmatprep.subr.bf16.mxu1 %v1735_v22  ;;  %v1769_v22 = vpack.c.bf16 %v1132_v19, %v1130_v18  ;;  %v1771_v23 = vpack.c.bf16 %v1137_v21, %v1135_v20  ;;  %v1175_v19 = vsel %vm664_vm3, %v1170_v51, %v1174_v16 }
 0x24f   : > { %1738 = vmatpush1.bf16.msra.mxu1 %v1737_v28  ;;  %v1141_v28 = vld [vmem:[#allocation7 + $0x538] sm:$0xff] }
 0x250   : > { %1740 = vmatprep.subr.bf16.mxu1 %v1739_v30  ;;  %v1773_v30 = vpack.c.bf16 %v1136_v26, %v1134_v24  ;;  %v1775_v33 = vpack.c.bf16 %v1141_v28, %v1139_v27  ;;  %v1891_v24 = vld [vmem:[%s2269_s12 + $0x8] sm:$0xff]  ;;  %v1892_v28 = vld [vmem:[%s2269_s12 + $0x10] sm:$0xff] }
 0x252   : > { %1411 = vmatmul.mubr.msk.f32.vlgmr.msra.gmra.mrb[0].mxu1 %vm2331_vm2, %v2368_v25  ;;  %v1749_v25 = vpack.c.bf16 %v1112_v62, %v1110_v56  ;;  %v1146_v56 = vld [vmem:[#allocation7 + $0x560] sm:$0xff]  ;;  %v1148_v62 = vld [vmem:[#allocation7 + $0x570] sm:$0xff] }
 0x253   : > { %1094 = vmatprep.mubr.f32.mxu1 %v2382_v35  ;;  %1742 = vmatpush1.bf16.msra.mxu1 %v1741_v38  ;;  %v1145_v38 = vld [vmem:[#allocation7 + $0x558] sm:$0xff] }
 0x254   : > { %1744 = vmatprep.subr.bf16.mxu1 %v1743_v41  ;;  %v1777_v41 = vpack.c.bf16 %v1140_v45, %v1138_v34  ;;  %v1779_v50 = vpack.c.bf16 %v1145_v38, %v1143_v37 }
 0x256   : > { %1095 = vmatmul.mubr.f32.gmra.mrb[2].mxu1 %v2379_v32 }
 0x257   : > { %1746 = vmatpush1.bf16.msra.mxu1 %v1745_v52  ;;  %1244 = vmatprep.mubr.f32.mxu1 %v1171_v13  ;;  %v1149_v52 = vld [vmem:[#allocation7 + $0x578] sm:$0xff]  ;;  %v1785_v13 = vpack.c.bf16 %v1148_v62, %v1146_v56 }
 0x258   : > { %1748 = vmatprep.subr.bf16.mxu1 %v1747_v55  ;;  %v1783_v55 = vpack.c.bf16 %v1149_v52, %v1147_v47 }
 0x25b   : > { %1750 = vmatpush1.bf16.msra.mxu1 %v1749_v25  ;;  %v1787_v25 = vpack.c.bf16 %v1153_v48, %v1151_v57 }
 0x25c   : > { %1752 = vmatprep.subr.bf16.mxu1 %v1751_v8  ;;  %v1150_v8 = vld [vmem:[#allocation7 + $0x580] sm:$0xff] }
 0x25d   : > { %v1789_v29 = vpack.c.bf16 %v1152_v58, %v1150_v8 }
 0x25f   : > { %1754 = vmatpush1.bf16.msra.mxu1 %v1753_v61  ;;  %v1791_v61 = vpack.c.bf16 %v1157_v60, %v1155_v59 }
 0x260   : > { %1756 = vmatprep.subr.bf16.mxu1 %v1755_v63  ;;  %v1154_v63 = vld [vmem:[#allocation7 + $0x5a0] sm:$0xff] }
 0x261   : > { %v1793_v1 = vpack.c.bf16 %v1156_v42, %v1154_v63 }
 0x263   : > { %1758 = vmatpush1.bf16.msra.mxu1 %v1757_v2  ;;  %v1795_v2 = vpack.c.bf16 %v1161_v0, %v1159_v46 }
 0x264   : > { %1760 = vmatprep.subr.bf16.mxu1 %v1759_v3  ;;  %v1158_v3 = vld [vmem:[#allocation7 + $0x5c0] sm:$0xff] }
 0x265   : > { %v1797_v7 = vpack.c.bf16 %v1160_v4, %v1158_v3 }
 0x267   : > { %1762 = vmatpush1.bf16.msra.mxu1 %v1761_v9  ;;  %v1799_v9 = vpack.c.bf16 %v1165_v6, %v1163_v5 }
 0x268   : > { %1764 = vmatprep.subr.bf16.mxu1 %v1763_v12  ;;  %v1162_v12 = vld [vmem:[#allocation7 + $0x5e0] sm:$0xff] }
 0x269   : > { %v1801_v49 = vpack.c.bf16 %v1164_v15, %v1162_v12 }
 0x26b   : > { %1766 = vmatpush1.bf16.msra.mxu1 %v1765_v17  ;;  %v1166_v17 = vrot.slane %v2375_v31, 2  ;;  %v1261_v31 = vld [vmem:[%s2487_s4] sm:$0x3] }
 0x26c   : > { %1768 = vmatprep.subr.bf16.mxu1 %v1767_v36  ;;  %v1172_v36 = vrot.slane %v2386_v39, 2  ;;  %v1266_v39 = vrot.slane %v1261_v31, %v764_v11  ;;  %v1270_v40 = vrot.slane %v1261_v31, %v768_v14 }
 0x26d   : > { %v1168_v18 = vsel %vm664_vm3, %v1166_v17, %v1167_v54 }
 0x26e   : > { %v1173_v32 = vsel %vm664_vm3, %v1167_v54, %v1172_v36 }
 0x26f   : > { %1770 = vmatpush1.bf16.msra.mxu1 %v1769_v22  ;;  %v1890_v22 = vld [vmem:[%s2269_s12] sm:$0xff] }
 0x270   : > { %1772 = vmatprep.subr.bf16.mxu1 %v1771_v23 }
 0x273   : > { %1774 = vmatpush1.bf16.msra.mxu1 %v1773_v30 }
 0x274   : > { %1776 = vmatprep.subr.bf16.mxu1 %v1775_v33  ;;  %v1893_v33 = vld [vmem:[%s2269_s12 + $0x18] sm:$0xff] }
 0x277   : > { %1778 = vmatpush1.bf16.msra.mxu1 %v1777_v41 }
 0x278   : > { %1780 = vmatprep.subr.bf16.mxu1 %v1779_v50 }
 0x27b   : > { %1782 = vmatpush1.bf16.msra.mxu1 %v1781_v53 }
 0x27c   : > { %1784 = vmatprep.subr.bf16.mxu1 %v1783_v55 }
 0x27f   : > { %1786 = vmatpush1.bf16.msra.mxu1 %v1785_v13 }
 0x280   : > { %1788 = vmatprep.subr.bf16.mxu1 %v1787_v25 }
 0x283   : > { %1790 = vmatpush1.bf16.msra.mxu1 %v1789_v29 }
 0x284   : > { %1792 = vmatprep.subr.bf16.mxu1 %v1791_v61 }
 0x287   : > { %1794 = vmatpush1.bf16.msra.mxu1 %v1793_v1 }
 0x288   : > { %1796 = vmatprep.subr.bf16.mxu1 %v1795_v2 }
 0x28b   : > { %1798 = vmatpush1.bf16.msra.mxu1 %v1797_v7 }
 0x28c   : > { %1800 = vmatprep.subr.bf16.mxu1 %v1799_v9 }
 0x28f   : > { %1802 = vmatpush1.bf16.msra.mxu1 %v1801_v49 }
 0x292   : > { %1245 = vmatmul.mubr.f32.vlgmr.msra.gmra.mrb[0].mxu1 %v1168_v18 }
 0x293   : > { %1250 = vmatprep.mubr.f32.mxu1 %v1175_v19 }
 0x296   : > { %1251 = vmatmul.mubr.f32.gmra.mrb[2].mxu1 %v1173_v32 }
 0x365   : > { %v1246_v20 = vpop.f32.mrb[0].mxu1 }
 0x366   : > { %v1273_v35 = vadd.f32 %v1266_v39, %v1246_v20  ;;  %v1248_v21 = vpop.f32.mrb[1].mxu1 }
 0x367   : > { %v1274_v51 = vadd.f32 %v1270_v40, %v1248_v21 }
 0x368   : > { %v1277_v23 = vadd.f32 %v1890_v22, %v1273_v35 }
 0x369   : > { %v1278_v26 = vadd.f32 %v1891_v24, %v1274_v51  ;;  %v1252_v27 = vpop.f32.mrb[2].mxu1 }
 0x36a   : > { %1281 = vst [vmem:[%s271_s10] sm:$0xff] %v1277_v23  ;;  %v1275_v10 = vadd.f32 %v1266_v39, %v1252_v27  ;;  %v1254_v11 = vpop.f32.mrb[3].mxu1 }
 0x36b   : > { %1282 = vst [vmem:[%s271_s10 + $0x8] sm:$0xff] %v1278_v26  ;;  %v1276_v14 = vadd.f32 %v1270_v40, %v1254_v11 }
 0x36c   : > { %v1279_v30 = vadd.f32 %v1892_v28, %v1275_v10 }
 0x36d   : > { %v1280_v34 = vadd.f32 %v1893_v33, %v1276_v14 }
 0x36e   : > { %1283 = vst [vmem:[%s271_s10 + $0x10] sm:$0xff] %v1279_v30 }
 0x36f   : > { %1284 = vst [vmem:[%s271_s10 + $0x18] sm:$0xff] %v1280_v34 }
 0x370   : > { %1993 = shalt.err (!%p1990_p7)
}
 0x371   : > { %s1994_s12 = scalar_lea.hbm %s2439_s11, 512  ;;  %s1998_s15 = scalar_lea.hbm %s2488_s5, 4096 }
 0x372   : > { %p1995_p9 = scmp.ne.s32.totalorder %s2439_s11, %s1994_s12  ;;  %p1999_p5 = scmp.lt.u32.totalorder %s2439_s11, %s2488_s5 }
 0x373   : > { %p2000_p10 = scmp.lt.u32.totalorder %s1998_s15, %s1994_s12  ;;  %p2002_p2 = scmp.lt.u32.totalorder %s1994_s12, %s2439_s11 }
 0x374   : > { %p1996_p12 = pnand %p1995_p9, %p2208_p6 }
 0x375   : > { %p2001_p1 = por %p2000_p10, %p1999_p5 }
 0x376   : > { %p1997_p0 = pneg %p1996_p12 }
 0x377   : > { %p2003_p4 = por %p2002_p2, %p2001_p1 }
 0x379   : > { %p2004_p8 = pnand %p2003_p4, %p1997_p0 }
 0x37b   : > { %2007 = shalt.err (!%p2004_p8)
}
 0x37c   : > { %s2058_s13 = smov 256   ;;  %s2059_s9 = smov 16  }
 0x37d   : > { %1829 = dma.vmem_to_hbm [thread:$0]  (%p2208_p6), %s2433_s28, 512, %s2439_s11, %s1286_s22, %s2058_s13, %s2058_s13, %s2059_s9  }
 0x37e PF: > { %p1851_p11 = scmp.ge.s32.totalorder %s2050_s21, 2  ;;  %s1314_s30 = sand.u32 1, %s2038_s18  }
 0x37f   : > { %p2505_p13 = scmp.ne.s32.totalorder %s2493_s25, 0  ;;  %s1315_s17 = scalar_lea.sflag [#allocation4], %s1314_s30 }
 0x381   : > { %p1843_p3 = pnand %p1851_p11, %p2505_p13 }
 0x383   : > { %2033 = dma.done.wait (!%p1843_p3), %s1315_s17, 512  }
 0x384   : > { %2035 = vsyncadd (!%p1843_p3), %s1315_s17, 4294966784  ;;  %p19_p7 = scmp.ge.s32.totalorder %s2198_s29, 10   ;;  %s2506_s18 = smov %s2042_s19 }
 0x385   : > { %s2507_s19 = smov %s2046_s20  ;;  %s2508_s20 = smov %s2214_s27 }
 0x386   : > { %s2509_s21 = smov %s2198_s29  ;;  %21 = sbr.rel (!%p19_p7) target bundleno = 6 (0x6), region = 97 }
 0x38d   :  { %1320 = vsyncpa [#allocation3], 1 }
 0x38e   :  { %1322 = vsyncpa [#allocation3 + $0x1], 1 }
 0x38f   :  { %1323 = vsyncpa [#allocation6], 1 }
 0x390   :  { %1324 = vsyncpa [#allocation4], 1 }
 0x391   :  { %1326 = vsyncpa [#allocation4 + $0x1], 1 }

</bundles_post_ra>
